<compile_context>
chip_gen: v7x
topology: tpu7x:2x2x1
jax: 0.10.0
libtpu: 0.0.40
codegen_flags: <defaults>
</compile_context>

<pallas_src>
import jax
import jax.numpy as jnp
from jax.experimental import pallas as pl
from jax.experimental.pallas import tpu as pltpu

IN_DIM = 28 * 28   # 784 (kernel block's last dim == full array dim -> legal)
HID = 512
OUT_DIM = 10
OUT_PAD = 128      # lane-dense output width (unmasked vst); sliced to 10 outside
MAX_TILE = 1024    # largest batch tile (per review: 512-1024 amortizes step overhead)


def mlp_kernel(x_ref, w1_ref, b1_ref, w2_ref, b2_ref, w3_ref, b3_ref, o_ref):
    # Cast x f32 -> bf16 once, in VMEM (saves the wrapper's extra HBM passes).
    x = x_ref[...].astype(jnp.bfloat16)
    # Layer 1: (TILE, 784)bf16 @ (784, 512)bf16 -> f32 acc, bias + ReLU in f32.
    h1 = jnp.dot(x, w1_ref[...], preferred_element_type=jnp.float32)
    h1 = jnp.maximum(h1 + b1_ref[...], 0.0)
    # Layer 2: (TILE, 512) @ (512, 512)
    h2 = jnp.dot(h1.astype(jnp.bfloat16), w2_ref[...],
                 preferred_element_type=jnp.float32)
    h2 = jnp.maximum(h2 + b2_ref[...], 0.0)
    # Layer 3 (logits, padded to 128 lanes): (TILE, 512) @ (512, 128)
    h3 = jnp.dot(h2.astype(jnp.bfloat16), w3_ref[...],
                 preferred_element_type=jnp.float32)
    o_ref[...] = (h3 + b3_ref[...]).astype(o_ref.dtype)


def _round_up(x, m):
    return (x + m - 1) // m * m


def _pick_tile(n):
    """Return (batch_tile, padded_batch).  Tile is a multiple of 16 (bf16
    sublane pack).  Small batches pad minimally (single grid step); larger
    batches keep the grid length >= 2 (both v7x TensorCores busy) with tiles
    capped at MAX_TILE rows to amortize per-step overhead."""
    n16 = _round_up(max(n, 1), 16)
    if n16 <= 256:
        return n16, n16
    tile = min(MAX_TILE, _round_up(-(-n16 // 2), 16))
    return tile, _round_up(n16, tile)


@jax.jit
def neural_network_forward(x_nchw, params):
    """x_nchw: (N, 1, 28, 28) float32. Returns logits (N, 10) float32."""
    w1, b1, w2, b2, w3, b3 = params
    n = x_nchw.shape[0]

    # nn.Flatten: (N, 784).  Reshape is free; keep f32 (cast to bf16 in-kernel).
    x_flat = x_nchw.reshape(n, -1).astype(jnp.float32)

    tile_n, n_pad = _pick_tile(n)
    if n_pad != n:
        x_flat = jnp.pad(x_flat, ((0, n_pad - n), (0, 0)))

    # bf16 weights; biases stay f32 for the f32 epilogue.  Only layer 3 is
    # padded (10 -> 128 output lanes); w1 keeps its natural (784, 512) shape.
    w1_p = w1.astype(jnp.bfloat16)
    w2_p = w2.astype(jnp.bfloat16)
    w3_p = jnp.zeros((HID, OUT_PAD), jnp.bfloat16).at[:, :OUT_DIM].set(
        w3.astype(jnp.bfloat16))
    b1_p = b1.astype(jnp.float32)
    b2_p = b2.astype(jnp.float32)
    b3_p = jnp.zeros((1, OUT_PAD), jnp.float32).at[:, :OUT_DIM].set(
        b3.astype(jnp.float32))

    grid = (n_pad // tile_n,)

    flops = 2 * n_pad * (IN_DIM * HID + HID * HID + HID * OUT_PAD)
    bytes_accessed = (n_pad * IN_DIM * 4                      # x (f32, single pass)
                      + (w1_p.size + w2_p.size + w3_p.size) * 2
                      + (b1_p.size + b2_p.size + b3_p.size) * 4
                      + n_pad * OUT_PAD * 4)                  # padded logits out

    out = pl.pallas_call(
        mlp_kernel,
        out_shape=jax.ShapeDtypeStruct((n_pad, OUT_PAD), jnp.float32),
        grid=grid,
        in_specs=[
            pl.BlockSpec((tile_n, IN_DIM), lambda i: (i, 0)),   # x: batch-tiled
            pl.BlockSpec((IN_DIM, HID), lambda i: (0, 0)),      # w1: resident
            pl.BlockSpec((1, HID), lambda i: (0, 0)),           # b1
            pl.BlockSpec((HID, HID), lambda i: (0, 0)),         # w2
            pl.BlockSpec((1, HID), lambda i: (0, 0)),           # b2
            pl.BlockSpec((HID, OUT_PAD), lambda i: (0, 0)),     # w3 (10->128 pad)
            pl.BlockSpec((1, OUT_PAD), lambda i: (0, 0)),       # b3
        ],
        out_specs=pl.BlockSpec((tile_n, OUT_PAD), lambda i: (i, 0)),
        compiler_params=pltpu.CompilerParams(
            dimension_semantics=("parallel",),
            vmem_limit_bytes=32 * 1024 * 1024),
        cost_estimate=pl.CostEstimate(
            flops=flops, transcendentals=0, bytes_accessed=bytes_accessed),
    )(x_flat, w1_p, b1_p, w2_p, b2_p, w3_p, b3_p)

    return out[:n, :OUT_DIM]


def init_params(key):
    """Deterministic init mimicking nn.Linear's U(-1/sqrt(fan_in), 1/sqrt(fan_in)).
    Weights returned pre-transposed as (in, out); biases as (1, out); fp32."""
    ks = jax.random.split(key, 6)

    def linear(kw, kb, fan_in, fan_out):
        bound = 1.0 / jnp.sqrt(fan_in)
        w = jax.random.uniform(kw, (fan_in, fan_out), jnp.float32, -bound, bound)
        b = jax.random.uniform(kb, (1, fan_out), jnp.float32, -bound, bound)
        return w, b

    w1, b1 = linear(ks[0], ks[1], IN_DIM, HID)
    w2, b2 = linear(ks[2], ks[3], HID, HID)
    w3, b3 = linear(ks[4], ks[5], HID, OUT_DIM)
    return (w1, b1, w2, b2, w3, b3)


def reference_forward(x_nchw, params):
    """Pure fp32 JAX reference (matches the PyTorch module's math)."""
    w1, b1, w2, b2, w3, b3 = params
    x = x_nchw.reshape(x_nchw.shape[0], -1)
    h = jnp.maximum(x @ w1 + b1, 0.0)
    h = jnp.maximum(h @ w2 + b2, 0.0)
    return h @ w3 + b3


if __name__ == "__main__":
    key = jax.random.PRNGKey(0)
    k_x, k_p = jax.random.split(key)

    batch = 8
    x = jax.random.normal(k_x, (batch, 1, 28, 28), dtype=jnp.float32)  # NCHW
    params = init_params(k_p)

    logits = neural_network_forward(x, params)
    logits = jax.block_until_ready(logits)

    ref = reference_forward(x, params)
    assert logits.shape == (batch, OUT_DIM)
    # bf16 matmul inputs with f32 accumulation -> ~1e-3 abs error on O(0.3) logits.
    assert jnp.allclose(logits, ref, atol=2e-2, rtol=2e-2), "mismatch vs reference"

    print("KERNEL_OK")
</pallas_src>

<mosaic_0001>
module attributes {stable_mosaic.version = 11 : i64} {
  func.func @mlp_kernel(%arg0: i32, %arg1: memref<16x784xf32, #tpu.memory_space<vmem>>, %arg2: memref<784x512xbf16, #tpu.memory_space<vmem>>, %arg3: memref<1x512xf32, #tpu.memory_space<vmem>>, %arg4: memref<512x512xbf16, #tpu.memory_space<vmem>>, %arg5: memref<1x512xf32, #tpu.memory_space<vmem>>, %arg6: memref<512x128xbf16, #tpu.memory_space<vmem>>, %arg7: memref<1x128xf32, #tpu.memory_space<vmem>>, %arg8: memref<16x128xf32, #tpu.memory_space<vmem>>) attributes {dimension_semantics = [#tpu.dimension_semantics<parallel>], iteration_bounds = array<i64: 1>, scalar_prefetch = 0 : i64, scratch_operands = 0 : i64, tpu.core_type = #tpu.core_type<tc>, window_params = [{transform_indices = @transform_0, window_bounds = array<i64: 16, 784>}, {pipeline_mode = #tpu.pipeline_mode<synchronous>, transform_indices = @transform_1, window_bounds = array<i64: 784, 512>}, {pipeline_mode = #tpu.pipeline_mode<synchronous>, transform_indices = @transform_2, window_bounds = array<i64: 1, 512>}, {pipeline_mode = #tpu.pipeline_mode<synchronous>, transform_indices = @transform_3, window_bounds = array<i64: 512, 512>}, {pipeline_mode = #tpu.pipeline_mode<synchronous>, transform_indices = @transform_4, window_bounds = array<i64: 1, 512>}, {pipeline_mode = #tpu.pipeline_mode<synchronous>, transform_indices = @transform_5, window_bounds = array<i64: 512, 128>}, {pipeline_mode = #tpu.pipeline_mode<synchronous>, transform_indices = @transform_6, window_bounds = array<i64: 1, 128>}, {transform_indices = @transform_7, window_bounds = array<i64: 16, 128>}]} {
    %c0 = arith.constant 0 : index
    %c0_0 = arith.constant 0 : index
    %0 = vector.load %arg1[%c0, %c0_0] : memref<16x784xf32, #tpu.memory_space<vmem>>, vector<16x784xf32>
    %1 = arith.truncf %0 : vector<16x784xf32> to vector<16x784xbf16>
    %c0_1 = arith.constant 0 : index
    %c0_2 = arith.constant 0 : index
    %2 = vector.load %arg2[%c0_1, %c0_2] : memref<784x512xbf16, #tpu.memory_space<vmem>>, vector<784x512xbf16>
    %cst = arith.constant dense<0.000000e+00> : vector<16x512xf32>
    %3 = tpu.matmul %1, %2, %cst {dimension_numbers = #tpu.dot_dimension_numbers<[1], [0], [0], [1], [0, 0, 1, 1], [], []>} : vector<16x784xbf16>, vector<784x512xbf16>, vector<16x512xf32> -> vector<16x512xf32>
    %c0_3 = arith.constant 0 : index
    %c0_4 = arith.constant 0 : index
    %4 = vector.load %arg3[%c0_3, %c0_4] : memref<1x512xf32, #tpu.memory_space<vmem>>, vector<1x512xf32>
    %5 = vector.broadcast %4 : vector<1x512xf32> to vector<16x512xf32>
    %6 = arith.addf %3, %5 : vector<16x512xf32>
    %cst_5 = arith.constant 0.000000e+00 : f32
    %7 = vector.broadcast %cst_5 : f32 to vector<16x512xf32>
    %8 = arith.maximumf %6, %7 : vector<16x512xf32>
    %9 = arith.truncf %8 : vector<16x512xf32> to vector<16x512xbf16>
    %c0_6 = arith.constant 0 : index
    %c0_7 = arith.constant 0 : index
    %10 = vector.load %arg4[%c0_6, %c0_7] : memref<512x512xbf16, #tpu.memory_space<vmem>>, vector<512x512xbf16>
    %cst_8 = arith.constant dense<0.000000e+00> : vector<16x512xf32>
    %11 = tpu.matmul %9, %10, %cst_8 {dimension_numbers = #tpu.dot_dimension_numbers<[1], [0], [0], [1], [0, 0, 1, 1], [], []>} : vector<16x512xbf16>, vector<512x512xbf16>, vector<16x512xf32> -> vector<16x512xf32>
    %c0_9 = arith.constant 0 : index
    %c0_10 = arith.constant 0 : index
    %12 = vector.load %arg5[%c0_9, %c0_10] : memref<1x512xf32, #tpu.memory_space<vmem>>, vector<1x512xf32>
    %13 = vector.broadcast %12 : vector<1x512xf32> to vector<16x512xf32>
    %14 = arith.addf %11, %13 : vector<16x512xf32>
    %cst_11 = arith.constant 0.000000e+00 : f32
    %15 = vector.broadcast %cst_11 : f32 to vector<16x512xf32>
    %16 = arith.maximumf %14, %15 : vector<16x512xf32>
    %17 = arith.truncf %16 : vector<16x512xf32> to vector<16x512xbf16>
    %c0_12 = arith.constant 0 : index
    %c0_13 = arith.constant 0 : index
    %18 = vector.load %arg6[%c0_12, %c0_13] : memref<512x128xbf16, #tpu.memory_space<vmem>>, vector<512x128xbf16>
    %cst_14 = arith.constant dense<0.000000e+00> : vector<16x128xf32>
    %19 = tpu.matmul %17, %18, %cst_14 {dimension_numbers = #tpu.dot_dimension_numbers<[1], [0], [0], [1], [0, 0, 1, 1], [], []>} : vector<16x512xbf16>, vector<512x128xbf16>, vector<16x128xf32> -> vector<16x128xf32>
    %c0_15 = arith.constant 0 : index
    %c0_16 = arith.constant 0 : index
    %20 = vector.load %arg7[%c0_15, %c0_16] : memref<1x128xf32, #tpu.memory_space<vmem>>, vector<1x128xf32>
    %21 = vector.broadcast %20 : vector<1x128xf32> to vector<16x128xf32>
    %22 = arith.addf %19, %21 : vector<16x128xf32>
    %c0_17 = arith.constant 0 : index
    %c0_18 = arith.constant 0 : index
    %23 = vector.load %arg8[%c0_17, %c0_18] : memref<16x128xf32, #tpu.memory_space<vmem>>, vector<16x128xf32>
    tpu.vector_store %arg8[%c0_17, %c0_18], %22 {strides = array<i32>} : memref<16x128xf32, #tpu.memory_space<vmem>>, vector<16x128xf32>,
    return
  }
  func.func @transform_0(%arg0: i32) -> (i32, i32) {
    %c0_i32 = arith.constant 0 : i32
    %c0_i32_0 = arith.constant 0 : i32
    return %arg0, %c0_i32 : i32, i32
  }
  func.func @transform_1(%arg0: i32) -> (i32, i32) {
    %c0_i32 = arith.constant 0 : i32
    %c0_i32_0 = arith.constant 0 : i32
    %c0_i32_1 = arith.constant 0 : i32
    return %c0_i32, %c0_i32_0 : i32, i32
  }
  func.func @transform_2(%arg0: i32) -> (i32, i32) {
    %c0_i32 = arith.constant 0 : i32
    %c0_i32_0 = arith.constant 0 : i32
    %c0_i32_1 = arith.constant 0 : i32
    return %c0_i32, %c0_i32_0 : i32, i32
  }
  func.func @transform_3(%arg0: i32) -> (i32, i32) {
    %c0_i32 = arith.constant 0 : i32
    %c0_i32_0 = arith.constant 0 : i32
    %c0_i32_1 = arith.constant 0 : i32
    return %c0_i32, %c0_i32_0 : i32, i32
  }
  func.func @transform_4(%arg0: i32) -> (i32, i32) {
    %c0_i32 = arith.constant 0 : i32
    %c0_i32_0 = arith.constant 0 : i32
    %c0_i32_1 = arith.constant 0 : i32
    return %c0_i32, %c0_i32_0 : i32, i32
  }
  func.func @transform_5(%arg0: i32) -> (i32, i32) {
    %c0_i32 = arith.constant 0 : i32
    %c0_i32_0 = arith.constant 0 : i32
    %c0_i32_1 = arith.constant 0 : i32
    return %c0_i32, %c0_i32_0 : i32, i32
  }
  func.func @transform_6(%arg0: i32) -> (i32, i32) {
    %c0_i32 = arith.constant 0 : i32
    %c0_i32_0 = arith.constant 0 : i32
    %c0_i32_1 = arith.constant 0 : i32
    return %c0_i32, %c0_i32_0 : i32, i32
  }
  func.func @transform_7(%arg0: i32) -> (i32, i32) {
    %c0_i32 = arith.constant 0 : i32
    %c0_i32_0 = arith.constant 0 : i32
    return %arg0, %c0_i32 : i32, i32
  }
}

</mosaic_0001>

<bundles_post_ra>
// kernel: neural_network_forward.1
= control target key start
LH: loop header
LB: loop body
LE: loop exit
PB: predicated region body
PF: predicated region fallthrough
CT: control target
= control target key end

     0   :  { %vm1246_vm0 = vcmask 130048   ;;  %s5093_s1 = inlined_call_operand.vmem [shape: bf16[784,512], index: 1, kind: input, shape index: {}]   ;;  %s5094_s0 = inlined_call_operand.vmem [shape: f32[16,784], index: 0, kind: input, shape index: {}]   ;;  %s5095_s3 = inlined_call_operand.vmem [shape: bf16[512,512], index: 3, kind: input, shape index: {}]   ;;  %s5096_s5 = inlined_call_operand.vmem [shape: bf16[512,128], index: 5, kind: input, shape index: {}]   ;;  %s5097_s2 = inlined_call_operand.vmem [shape: f32[1,512], index: 2, kind: input, shape index: {}]   ;;  %s5098_s4 = inlined_call_operand.vmem [shape: f32[1,512], index: 4, kind: input, shape index: {}]   ;;  %s5099_s6 = inlined_call_operand.vmem [shape: f32[1,128], index: 6, kind: input, shape index: {}]   ;;  %s5100_s7 = inlined_call_operand.vmem [shape: f32[16,128], index: 7, kind: output, shape index: {}]  }
   0x1   :  { %v3383_v0 = vld [vmem:[%s5093_s1 + $0x4] ss:$16 sps:$4 sm:$0xff]   ;;  %v3385_v1 = vld [vmem:[%s5093_s1 + $0xc] ss:$16 sps:$4 sm:$0xff]   ;;  %v3387_v2 = vld [vmem:[%s5093_s1] ss:$16 sps:$4 sm:$0xff]  }
   0x2   :  { %1250 = vmatprep.subr.bf16.mxu0 %v3383_v0  ;;  %v3388_v3 = vld [vmem:[%s5093_s1 + $0x8] ss:$16 sps:$4 sm:$0xff]   ;;  %1422 = vmatprep.subr.bf16.mxu1 %v3385_v1  ;;  %v3389_v4 = vld [vmem:[%s5093_s1 + $0x24] ss:$16 sps:$4 sm:$0xff]   ;;  %v3391_v5 = vld [vmem:[%s5093_s1 + $0x2c] ss:$16 sps:$4 sm:$0xff]  }
   0x3   :  { %1251 = vmatpush1.bf16.msra.mxu0 %v3387_v2  ;;  %1423 = vmatpush1.bf16.msra.mxu1 %v3388_v3  ;;  %v3393_v6 = vld [vmem:[%s5093_s1 + $0x20] ss:$16 sps:$4 sm:$0xff]   ;;  %v3394_v7 = vld [vmem:[%s5093_s1 + $0x28] ss:$16 sps:$4 sm:$0xff]   ;;  %v3395_v8 = vld [vmem:[%s5093_s1 + $0x44] ss:$16 sps:$4 sm:$0xff]  }
   0x4   :  { %1252 = vmatprep.subr.bf16.mxu0 %v3389_v4  ;;  %1424 = vmatprep.subr.bf16.mxu1 %v3391_v5  ;;  %v3397_v9 = vld [vmem:[%s5093_s1 + $0x4c] ss:$16 sps:$4 sm:$0xff]   ;;  %v3399_v10 = vld [vmem:[%s5093_s1 + $0x40] ss:$16 sps:$4 sm:$0xff]   ;;  %v3400_v11 = vld [vmem:[%s5093_s1 + $0x48] ss:$16 sps:$4 sm:$0xff]  }
   0x5   :  { %v3401_v12 = vld [vmem:[%s5093_s1 + $0x64] ss:$16 sps:$4 sm:$0xff]   ;;  %v3403_v13 = vld [vmem:[%s5093_s1 + $0x6c] ss:$16 sps:$4 sm:$0xff]   ;;  %v3405_v14 = vld [vmem:[%s5093_s1 + $0x60] ss:$16 sps:$4 sm:$0xff]  }
   0x6   :  { %v3406_v15 = vld [vmem:[%s5093_s1 + $0x68] ss:$16 sps:$4 sm:$0xff]   ;;  %v3407_v16 = vld [vmem:[%s5093_s1 + $0x84] ss:$16 sps:$4 sm:$0xff]   ;;  %v3409_v17 = vld [vmem:[%s5093_s1 + $0x8c] ss:$16 sps:$4 sm:$0xff]  }
   0x7   :  { %1253 = vmatpush1.bf16.msra.mxu0 %v3393_v6  ;;  %1425 = vmatpush1.bf16.msra.mxu1 %v3394_v7  ;;  %v3411_v18 = vld [vmem:[%s5093_s1 + $0x80] ss:$16 sps:$4 sm:$0xff]   ;;  %v3412_v19 = vld [vmem:[%s5093_s1 + $0x88] ss:$16 sps:$4 sm:$0xff]   ;;  %v3413_v20 = vld [vmem:[%s5093_s1 + $0xa4] ss:$16 sps:$4 sm:$0xff]  }
   0x8   :  { %1254 = vmatprep.subr.bf16.mxu0 %v3395_v8  ;;  %1426 = vmatprep.subr.bf16.mxu1 %v3397_v9  ;;  %v3415_v21 = vld [vmem:[%s5093_s1 + $0xac] ss:$16 sps:$4 sm:$0xff]   ;;  %v3417_v22 = vld [vmem:[%s5093_s1 + $0xa0] ss:$16 sps:$4 sm:$0xff]   ;;  %v3418_v23 = vld [vmem:[%s5093_s1 + $0xa8] ss:$16 sps:$4 sm:$0xff]  }
   0x9   :  { %v3419_v24 = vld [vmem:[%s5093_s1 + $0xc4] ss:$16 sps:$4 sm:$0xff]   ;;  %v3421_v25 = vld [vmem:[%s5093_s1 + $0xcc] ss:$16 sps:$4 sm:$0xff]   ;;  %v3423_v26 = vld [vmem:[%s5093_s1 + $0xc0] ss:$16 sps:$4 sm:$0xff]  }
   0xa   :  { %v3424_v27 = vld [vmem:[%s5093_s1 + $0xc8] ss:$16 sps:$4 sm:$0xff]   ;;  %v3425_v28 = vld [vmem:[%s5093_s1 + $0xe4] ss:$16 sps:$4 sm:$0xff]   ;;  %v3427_v29 = vld [vmem:[%s5093_s1 + $0xec] ss:$16 sps:$4 sm:$0xff]  }
   0xb   :  { %1255 = vmatpush1.bf16.msra.mxu0 %v3399_v10  ;;  %1427 = vmatpush1.bf16.msra.mxu1 %v3400_v11  ;;  %v3429_v30 = vld [vmem:[%s5093_s1 + $0xe0] ss:$16 sps:$4 sm:$0xff]   ;;  %v3430_v31 = vld [vmem:[%s5093_s1 + $0xe8] ss:$16 sps:$4 sm:$0xff]   ;;  %v3431_v32 = vld [vmem:[%s5093_s1 + $0x104] ss:$16 sps:$4 sm:$0xff]  }
   0xc   :  { %1256 = vmatprep.subr.bf16.mxu0 %v3401_v12  ;;  %1428 = vmatprep.subr.bf16.mxu1 %v3403_v13  ;;  %v3433_v33 = vld [vmem:[%s5093_s1 + $0x10c] ss:$16 sps:$4 sm:$0xff]   ;;  %v3435_v34 = vld [vmem:[%s5093_s1 + $0x100] ss:$16 sps:$4 sm:$0xff]   ;;  %v3436_v35 = vld [vmem:[%s5093_s1 + $0x108] ss:$16 sps:$4 sm:$0xff]  }
   0xd   :  { %v3437_v36 = vld [vmem:[%s5093_s1 + $0x124] ss:$16 sps:$4 sm:$0xff]   ;;  %v3439_v37 = vld [vmem:[%s5093_s1 + $0x12c] ss:$16 sps:$4 sm:$0xff]   ;;  %v3441_v38 = vld [vmem:[%s5093_s1 + $0x120] ss:$16 sps:$4 sm:$0xff]  }
   0xe   :  { %v3442_v39 = vld [vmem:[%s5093_s1 + $0x128] ss:$16 sps:$4 sm:$0xff]   ;;  %v3443_v40 = vld [vmem:[%s5093_s1 + $0x144] ss:$16 sps:$4 sm:$0xff]   ;;  %v3445_v41 = vld [vmem:[%s5093_s1 + $0x14c] ss:$16 sps:$4 sm:$0xff]  }
   0xf   :  { %1257 = vmatpush1.bf16.msra.mxu0 %v3405_v14  ;;  %1429 = vmatpush1.bf16.msra.mxu1 %v3406_v15  ;;  %v3447_v42 = vld [vmem:[%s5093_s1 + $0x140] ss:$16 sps:$4 sm:$0xff]   ;;  %v3448_v43 = vld [vmem:[%s5093_s1 + $0x148] ss:$16 sps:$4 sm:$0xff]   ;;  %v3449_v44 = vld [vmem:[%s5093_s1 + $0x164] ss:$16 sps:$4 sm:$0xff]  }
  0x10   :  { %1258 = vmatprep.subr.bf16.mxu0 %v3407_v16  ;;  %1430 = vmatprep.subr.bf16.mxu1 %v3409_v17  ;;  %v3451_v45 = vld [vmem:[%s5093_s1 + $0x16c] ss:$16 sps:$4 sm:$0xff]   ;;  %v35_v47 = vld [vmem:[%s5094_s0 + $0x40] sm:$0xff]  ;;  %v3454_v49 = vld [vmem:[%s5093_s1 + $0x168] ss:$16 sps:$4 sm:$0xff]  }
  0x11   :  { %v28_v46 = vld [vmem:[%s5094_s0 + $0x8] sm:$0xff]  ;;  %v3453_v48 = vld [vmem:[%s5093_s1 + $0x160] ss:$16 sps:$4 sm:$0xff]   ;;  %v3455_v51 = vld [vmem:[%s5093_s1 + $0x184] ss:$16 sps:$4 sm:$0xff]  }
  0x12   :  { %v42_v50 = vpack.c.bf16 %v35_v47, %v28_v46  ;;  %v3457_v52 = vld [vmem:[%s5093_s1 + $0x18c] ss:$16 sps:$4 sm:$0xff]   ;;  %v3459_v53 = vld [vmem:[%s5093_s1 + $0x180] ss:$16 sps:$4 sm:$0xff]   ;;  %v3460_v54 = vld [vmem:[%s5093_s1 + $0x188] ss:$16 sps:$4 sm:$0xff]  }
  0x13   :  { %1259 = vmatpush1.bf16.msra.mxu0 %v3411_v18  ;;  %1431 = vmatpush1.bf16.msra.mxu1 %v3412_v19  ;;  %v3461_v55 = vld [vmem:[%s5093_s1 + $0x1a4] ss:$16 sps:$4 sm:$0xff]   ;;  %v3463_v56 = vld [vmem:[%s5093_s1 + $0x1ac] ss:$16 sps:$4 sm:$0xff]   ;;  %v3465_v57 = vld [vmem:[%s5093_s1 + $0x1a0] ss:$16 sps:$4 sm:$0xff]  }
  0x14   :  { %1260 = vmatprep.subr.bf16.mxu0 %v3413_v20  ;;  %1432 = vmatprep.subr.bf16.mxu1 %v3415_v21  ;;  %v3466_v58 = vld [vmem:[%s5093_s1 + $0x1a8] ss:$16 sps:$4 sm:$0xff]   ;;  %v3467_v59 = vld [vmem:[%s5093_s1 + $0x1c4] ss:$16 sps:$4 sm:$0xff]   ;;  %v3469_v60 = vld [vmem:[%s5093_s1 + $0x1cc] ss:$16 sps:$4 sm:$0xff]  }
  0x15   :  { %1282 = vmatprep.mubr.bf16.mxu0 %v42_v50  ;;  %1454 = vmatprep.mubr.bf16.mxu1 %v42_v50  ;;  %v3471_v61 = vld [vmem:[%s5093_s1 + $0x1c0] ss:$16 sps:$4 sm:$0xff]   ;;  %v3472_v62 = vld [vmem:[%s5093_s1 + $0x1c8] ss:$16 sps:$4 sm:$0xff]   ;;  %v3473_v63 = vld [vmem:[%s5093_s1 + $0x1e4] ss:$16 sps:$4 sm:$0xff]  }
  0x16   :  { %v3475_v0 = vld [vmem:[%s5093_s1 + $0x1ec] ss:$16 sps:$4 sm:$0xff]   ;;  %v3477_v1 = vld [vmem:[%s5093_s1 + $0x1e0] ss:$16 sps:$4 sm:$0xff]   ;;  %v3478_v2 = vld [vmem:[%s5093_s1 + $0x1e8] ss:$16 sps:$4 sm:$0xff]  }
  0x17   :  { %1261 = vmatpush1.bf16.msra.mxu0 %v3417_v22  ;;  %1433 = vmatpush1.bf16.msra.mxu1 %v3418_v23  ;;  %v3481_v3 = vld [vmem:[%s5093_s1 + $0x204] ss:$16 sps:$4 sm:$0xff]   ;;  %v34_v5 = vld [vmem:[%s5094_s0 + $0x38] sm:$0xff]  ;;  %v3479_v7 = vld [vmem:[%s5093_s1 + $0x200] ss:$16 sps:$4 sm:$0xff]  }
  0x18   :  { %1262 = vmatprep.subr.bf16.mxu0 %v3419_v24  ;;  %1434 = vmatprep.subr.bf16.mxu1 %v3421_v25  ;;  %v27_v4 = vld [vmem:[%s5094_s0] sm:$0xff]  ;;  %v3484_v6 = vld [vmem:[%s5093_s1 + $0x20c] ss:$16 sps:$4 sm:$0xff]   ;;  %v3482_v8 = vld [vmem:[%s5093_s1 + $0x208] ss:$16 sps:$4 sm:$0xff]  }
  0x19   :  { %v41_v9 = vpack.c.bf16 %v34_v5, %v27_v4  ;;  %v3487_v10 = vld [vmem:[%s5093_s1 + $0x224] ss:$16 sps:$4 sm:$0xff]   ;;  %v3490_v11 = vld [vmem:[%s5093_s1 + $0x22c] ss:$16 sps:$4 sm:$0xff]   ;;  %v3485_v12 = vld [vmem:[%s5093_s1 + $0x220] ss:$16 sps:$4 sm:$0xff]  }
  0x1a   :  { %v3488_v13 = vld [vmem:[%s5093_s1 + $0x228] ss:$16 sps:$4 sm:$0xff]   ;;  %v3493_v14 = vld [vmem:[%s5093_s1 + $0x244] ss:$16 sps:$4 sm:$0xff]   ;;  %v3496_v15 = vld [vmem:[%s5093_s1 + $0x24c] ss:$16 sps:$4 sm:$0xff]  }
  0x1b   :  { %1263 = vmatpush1.bf16.msra.mxu0 %v3423_v26  ;;  %1435 = vmatpush1.bf16.msra.mxu1 %v3424_v27  ;;  %v3491_v16 = vld [vmem:[%s5093_s1 + $0x240] ss:$16 sps:$4 sm:$0xff]   ;;  %v3494_v17 = vld [vmem:[%s5093_s1 + $0x248] ss:$16 sps:$4 sm:$0xff]   ;;  %v3499_v18 = vld [vmem:[%s5093_s1 + $0x264] ss:$16 sps:$4 sm:$0xff]  }
  0x1c   :  { %1264 = vmatprep.subr.bf16.mxu0 %v3425_v28  ;;  %1436 = vmatprep.subr.bf16.mxu1 %v3427_v29  ;;  %v3502_v19 = vld [vmem:[%s5093_s1 + $0x26c] ss:$16 sps:$4 sm:$0xff]   ;;  %v3497_v20 = vld [vmem:[%s5093_s1 + $0x260] ss:$16 sps:$4 sm:$0xff]   ;;  %v3500_v21 = vld [vmem:[%s5093_s1 + $0x268] ss:$16 sps:$4 sm:$0xff]  }
  0x1d   :  { %v3505_v22 = vld [vmem:[%s5093_s1 + $0x284] ss:$16 sps:$4 sm:$0xff]   ;;  %v3508_v23 = vld [vmem:[%s5093_s1 + $0x28c] ss:$16 sps:$4 sm:$0xff]   ;;  %v3503_v24 = vld [vmem:[%s5093_s1 + $0x280] ss:$16 sps:$4 sm:$0xff]  }
  0x1e   :  { %v3506_v25 = vld [vmem:[%s5093_s1 + $0x288] ss:$16 sps:$4 sm:$0xff]   ;;  %v3511_v26 = vld [vmem:[%s5093_s1 + $0x2a4] ss:$16 sps:$4 sm:$0xff]   ;;  %v3514_v27 = vld [vmem:[%s5093_s1 + $0x2ac] ss:$16 sps:$4 sm:$0xff]  }
  0x1f   :  { %1265 = vmatpush1.bf16.msra.mxu0 %v3429_v30  ;;  %1437 = vmatpush1.bf16.msra.mxu1 %v3430_v31  ;;  %v3509_v28 = vld [vmem:[%s5093_s1 + $0x2a0] ss:$16 sps:$4 sm:$0xff]   ;;  %v3512_v29 = vld [vmem:[%s5093_s1 + $0x2a8] ss:$16 sps:$4 sm:$0xff]   ;;  %v3517_v30 = vld [vmem:[%s5093_s1 + $0x2c4] ss:$16 sps:$4 sm:$0xff]  }
  0x20   :  { %1266 = vmatprep.subr.bf16.mxu0 %v3431_v32  ;;  %1438 = vmatprep.subr.bf16.mxu1 %v3433_v33  ;;  %v3520_v31 = vld [vmem:[%s5093_s1 + $0x2cc] ss:$16 sps:$4 sm:$0xff]   ;;  %v37_v33 = vld [vmem:[%s5094_s0 + $0x50] sm:$0xff]  ;;  %v3566_v4 = vld [vmem:[%s5093_s1 + $0x3c8] ss:$16 sps:$4 sm:$0xff]  }
  0x21   :  { %v30_v32 = vld [vmem:[%s5094_s0 + $0x18] sm:$0xff]  ;;  %v3533_v47 = vld [vmem:[%s5093_s1 + $0x320] ss:$16 sps:$4 sm:$0xff]   ;;  %v3571_v5 = vld [vmem:[%s5093_s1 + $0x3e4] ss:$16 sps:$4 sm:$0xff]  }
  0x22   :  { %v3538_v46 = vld [vmem:[%s5093_s1 + $0x32c] ss:$16 sps:$4 sm:$0xff]  }
  0x23   :  { %1267 = vmatpush1.bf16.msra.mxu0 %v3435_v34  ;;  %1439 = vmatpush1.bf16.msra.mxu1 %v3436_v35  ;;  %v3515_v34 = vld [vmem:[%s5093_s1 + $0x2c0] ss:$16 sps:$4 sm:$0xff]   ;;  %v3518_v35 = vld [vmem:[%s5093_s1 + $0x2c8] ss:$16 sps:$4 sm:$0xff]   ;;  %v3544_v50 = vld [vmem:[%s5093_s1 + $0x34c] ss:$16 sps:$4 sm:$0xff]  }
  0x24   :  { %1268 = vmatprep.subr.bf16.mxu0 %v3437_v36  ;;  %1440 = vmatprep.subr.bf16.mxu1 %v3439_v37  ;;  %v44_v36 = vpack.c.bf16 %v37_v33, %v30_v32  ;;  %v3523_v37 = vld [vmem:[%s5093_s1 + $0x2e4] ss:$16 sps:$4 sm:$0xff]   ;;  %v3604_v32 = vld [vmem:[%s5093_s1 + $0x48c] ss:$16 sps:$4 sm:$0xff]   ;;  %v3599_v33 = vld [vmem:[%s5093_s1 + $0x480] ss:$16 sps:$4 sm:$0xff]  }
  0x27   :  { %1269 = vmatpush1.bf16.msra.mxu0 %v3441_v38  ;;  %1441 = vmatpush1.bf16.msra.mxu1 %v3442_v39  ;;  %v3526_v38 = vld [vmem:[%s5093_s1 + $0x2ec] ss:$16 sps:$4 sm:$0xff]   ;;  %v3521_v39 = vld [vmem:[%s5093_s1 + $0x2e0] ss:$16 sps:$4 sm:$0xff]  }
  0x28   :  { %1270 = vmatprep.subr.bf16.mxu0 %v3443_v40  ;;  %1442 = vmatprep.subr.bf16.mxu1 %v3445_v41  ;;  %v3524_v40 = vld [vmem:[%s5093_s1 + $0x2e8] ss:$16 sps:$4 sm:$0xff]   ;;  %v3529_v41 = vld [vmem:[%s5093_s1 + $0x304] ss:$16 sps:$4 sm:$0xff]  }
  0x2b   :  { %1271 = vmatpush1.bf16.msra.mxu0 %v3447_v42  ;;  %1443 = vmatpush1.bf16.msra.mxu1 %v3448_v43  ;;  %v3532_v42 = vld [vmem:[%s5093_s1 + $0x30c] ss:$16 sps:$4 sm:$0xff]   ;;  %v3527_v43 = vld [vmem:[%s5093_s1 + $0x300] ss:$16 sps:$4 sm:$0xff]  }
  0x2c   :  { %1272 = vmatprep.subr.bf16.mxu0 %v3449_v44  ;;  %1444 = vmatprep.subr.bf16.mxu1 %v3451_v45  ;;  %v3530_v44 = vld [vmem:[%s5093_s1 + $0x308] ss:$16 sps:$4 sm:$0xff]   ;;  %v3535_v45 = vld [vmem:[%s5093_s1 + $0x324] ss:$16 sps:$4 sm:$0xff]  }
  0x2f   :  { %1273 = vmatpush1.bf16.msra.mxu0 %v3453_v48  ;;  %1445 = vmatpush1.bf16.msra.mxu1 %v3454_v49  ;;  %v3536_v48 = vld [vmem:[%s5093_s1 + $0x328] ss:$16 sps:$4 sm:$0xff]   ;;  %v3541_v49 = vld [vmem:[%s5093_s1 + $0x344] ss:$16 sps:$4 sm:$0xff]  }
  0x30   :  { %1274 = vmatprep.subr.bf16.mxu0 %v3455_v51  ;;  %1446 = vmatprep.subr.bf16.mxu1 %v3457_v52  ;;  %v3539_v51 = vld [vmem:[%s5093_s1 + $0x340] ss:$16 sps:$4 sm:$0xff]   ;;  %v3542_v52 = vld [vmem:[%s5093_s1 + $0x348] ss:$16 sps:$4 sm:$0xff]  }
  0x33   :  { %1275 = vmatpush1.bf16.msra.mxu0 %v3459_v53  ;;  %1447 = vmatpush1.bf16.msra.mxu1 %v3460_v54  ;;  %v3547_v53 = vld [vmem:[%s5093_s1 + $0x364] ss:$16 sps:$4 sm:$0xff]   ;;  %v3550_v54 = vld [vmem:[%s5093_s1 + $0x36c] ss:$16 sps:$4 sm:$0xff]  }
  0x34   :  { %1276 = vmatprep.subr.bf16.mxu0 %v3461_v55  ;;  %1448 = vmatprep.subr.bf16.mxu1 %v3463_v56  ;;  %v3545_v55 = vld [vmem:[%s5093_s1 + $0x360] ss:$16 sps:$4 sm:$0xff]   ;;  %v3548_v56 = vld [vmem:[%s5093_s1 + $0x368] ss:$16 sps:$4 sm:$0xff]  }
  0x37   :  { %1277 = vmatpush1.bf16.msra.mxu0 %v3465_v57  ;;  %1449 = vmatpush1.bf16.msra.mxu1 %v3466_v58  ;;  %v3553_v57 = vld [vmem:[%s5093_s1 + $0x384] ss:$16 sps:$4 sm:$0xff]   ;;  %v3556_v58 = vld [vmem:[%s5093_s1 + $0x38c] ss:$16 sps:$4 sm:$0xff]  }
  0x38   :  { %1278 = vmatprep.subr.bf16.mxu0 %v3467_v59  ;;  %1450 = vmatprep.subr.bf16.mxu1 %v3469_v60  ;;  %v3551_v59 = vld [vmem:[%s5093_s1 + $0x380] ss:$16 sps:$4 sm:$0xff]   ;;  %v3554_v60 = vld [vmem:[%s5093_s1 + $0x388] ss:$16 sps:$4 sm:$0xff]  }
  0x3b   :  { %1279 = vmatpush1.bf16.msra.mxu0 %v3471_v61  ;;  %1451 = vmatpush1.bf16.msra.mxu1 %v3472_v62  ;;  %v3559_v61 = vld [vmem:[%s5093_s1 + $0x3a4] ss:$16 sps:$4 sm:$0xff]   ;;  %v3562_v62 = vld [vmem:[%s5093_s1 + $0x3ac] ss:$16 sps:$4 sm:$0xff]  }
  0x3c   :  { %1280 = vmatprep.subr.bf16.mxu0 %v3473_v63  ;;  %1452 = vmatprep.subr.bf16.mxu1 %v3475_v0  ;;  %v3557_v63 = vld [vmem:[%s5093_s1 + $0x3a0] ss:$16 sps:$4 sm:$0xff]   ;;  %v3560_v0 = vld [vmem:[%s5093_s1 + $0x3a8] ss:$16 sps:$4 sm:$0xff]  }
  0x3f   :  { %1281 = vmatpush1.bf16.msra.mxu0 %v3477_v1  ;;  %1453 = vmatpush1.bf16.msra.mxu1 %v3478_v2  ;;  %v3565_v1 = vld [vmem:[%s5093_s1 + $0x3c4] ss:$16 sps:$4 sm:$0xff]   ;;  %v3568_v2 = vld [vmem:[%s5093_s1 + $0x3cc] ss:$16 sps:$4 sm:$0xff]  }
  0x40   :  { %1293 = vmatprep.subr.bf16.mxu0 %v3481_v3  ;;  %1465 = vmatprep.subr.bf16.mxu1 %v3484_v6  ;;  %v3563_v3 = vld [vmem:[%s5093_s1 + $0x3c0] ss:$16 sps:$4 sm:$0xff]   ;;  %v3574_v6 = vld [vmem:[%s5093_s1 + $0x3ec] ss:$16 sps:$4 sm:$0xff]  }
  0x42   :  { %1283 = vmatmul.mubr.bf16.vlgmr.msra.gmra.mrb[0].mxu0 %v41_v9  ;;  %1455 = vmatmul.mubr.bf16.vlgmr.msra.gmra.mrb[0].mxu1 %v41_v9  ;;  %v3577_v9 = vld [vmem:[%s5093_s1 + $0x404] ss:$16 sps:$4 sm:$0xff]  }
  0x43   :  { %1294 = vmatpush1.bf16.msra.mxu0 %v3479_v7  ;;  %1466 = vmatpush1.bf16.msra.mxu1 %v3482_v8  ;;  %v3569_v7 = vld [vmem:[%s5093_s1 + $0x3e0] ss:$16 sps:$4 sm:$0xff]   ;;  %v3572_v8 = vld [vmem:[%s5093_s1 + $0x3e8] ss:$16 sps:$4 sm:$0xff]  }
  0x44   :  { %1295 = vmatprep.subr.bf16.mxu0 %v3487_v10  ;;  %1467 = vmatprep.subr.bf16.mxu1 %v3490_v11  ;;  %v29_v10 = vld [vmem:[%s5094_s0 + $0x10] sm:$0xff]  ;;  %v36_v11 = vld [vmem:[%s5094_s0 + $0x48] sm:$0xff] }
  0x45   :  { %1325 = vmatprep.mubr.bf16.mxu0 %v44_v36  ;;  %1497 = vmatprep.mubr.bf16.mxu1 %v44_v36  ;;  %v3610_v36 = vld [vmem:[%s5093_s1 + $0x4ac] ss:$16 sps:$4 sm:$0xff]  }
  0x47   :  { %1296 = vmatpush1.bf16.msra.mxu0 %v3485_v12  ;;  %1468 = vmatpush1.bf16.msra.mxu1 %v3488_v13  ;;  %v3580_v12 = vld [vmem:[%s5093_s1 + $0x40c] ss:$16 sps:$4 sm:$0xff]   ;;  %v3575_v13 = vld [vmem:[%s5093_s1 + $0x400] ss:$16 sps:$4 sm:$0xff]  }
  0x48   :  { %1297 = vmatprep.subr.bf16.mxu0 %v3493_v14  ;;  %1469 = vmatprep.subr.bf16.mxu1 %v3496_v15  ;;  %v3578_v14 = vld [vmem:[%s5093_s1 + $0x408] ss:$16 sps:$4 sm:$0xff]   ;;  %v43_v15 = vpack.c.bf16 %v36_v11, %v29_v10  ;;  %v3667_v11 = vld [vmem:[%s5093_s1 + $0x5e4] ss:$16 sps:$4 sm:$0xff]  }
  0x49   :  { %v3662_v10 = vld [vmem:[%s5093_s1 + $0x5c8] ss:$16 sps:$4 sm:$0xff]  }
  0x4b   :  { %1298 = vmatpush1.bf16.msra.mxu0 %v3491_v16  ;;  %1470 = vmatpush1.bf16.msra.mxu1 %v3494_v17  ;;  %v3583_v16 = vld [vmem:[%s5093_s1 + $0x424] ss:$16 sps:$4 sm:$0xff]   ;;  %v3586_v17 = vld [vmem:[%s5093_s1 + $0x42c] ss:$16 sps:$4 sm:$0xff]  }
  0x4c   :  { %1299 = vmatprep.subr.bf16.mxu0 %v3499_v18  ;;  %1471 = vmatprep.subr.bf16.mxu1 %v3502_v19  ;;  %v32_v18 = vld [vmem:[%s5094_s0 + $0x28] sm:$0xff]  ;;  %v3581_v19 = vld [vmem:[%s5093_s1 + $0x420] ss:$16 sps:$4 sm:$0xff]  }
  0x4f   :  { %1300 = vmatpush1.bf16.msra.mxu0 %v3497_v20  ;;  %1472 = vmatpush1.bf16.msra.mxu1 %v3500_v21  ;;  %v3584_v20 = vld [vmem:[%s5093_s1 + $0x428] ss:$16 sps:$4 sm:$0xff]   ;;  %v39_v21 = vld [vmem:[%s5094_s0 + $0x60] sm:$0xff] }
  0x50   :  { %1301 = vmatprep.subr.bf16.mxu0 %v3505_v22  ;;  %1473 = vmatprep.subr.bf16.mxu1 %v3508_v23  ;;  %v3589_v22 = vld [vmem:[%s5093_s1 + $0x444] ss:$16 sps:$4 sm:$0xff]   ;;  %v46_v23 = vpack.c.bf16 %v39_v21, %v32_v18  ;;  %v3676_v18 = vld [vmem:[%s5093_s1 + $0x60c] ss:$16 sps:$4 sm:$0xff]  }
  0x53   :  { %1302 = vmatpush1.bf16.msra.mxu0 %v3503_v24  ;;  %1474 = vmatpush1.bf16.msra.mxu1 %v3506_v25  ;;  %v3592_v24 = vld [vmem:[%s5093_s1 + $0x44c] ss:$16 sps:$4 sm:$0xff]   ;;  %v3587_v25 = vld [vmem:[%s5093_s1 + $0x440] ss:$16 sps:$4 sm:$0xff]  }
  0x54   :  { %1303 = vmatprep.subr.bf16.mxu0 %v3511_v26  ;;  %1475 = vmatprep.subr.bf16.mxu1 %v3514_v27  ;;  %v3590_v26 = vld [vmem:[%s5093_s1 + $0x448] ss:$16 sps:$4 sm:$0xff]   ;;  %v3595_v27 = vld [vmem:[%s5093_s1 + $0x464] ss:$16 sps:$4 sm:$0xff]  }
  0x57   :  { %1304 = vmatpush1.bf16.msra.mxu0 %v3509_v28  ;;  %1476 = vmatpush1.bf16.msra.mxu1 %v3512_v29  ;;  %v3598_v28 = vld [vmem:[%s5093_s1 + $0x46c] ss:$16 sps:$4 sm:$0xff]   ;;  %v3593_v29 = vld [vmem:[%s5093_s1 + $0x460] ss:$16 sps:$4 sm:$0xff]  }
  0x58   :  { %1305 = vmatprep.subr.bf16.mxu0 %v3517_v30  ;;  %1477 = vmatprep.subr.bf16.mxu1 %v3520_v31  ;;  %v3596_v30 = vld [vmem:[%s5093_s1 + $0x468] ss:$16 sps:$4 sm:$0xff]   ;;  %v3601_v31 = vld [vmem:[%s5093_s1 + $0x484] ss:$16 sps:$4 sm:$0xff]  }
  0x5b   :  { %1306 = vmatpush1.bf16.msra.mxu0 %v3515_v34  ;;  %1478 = vmatpush1.bf16.msra.mxu1 %v3518_v35  ;;  %v3602_v34 = vld [vmem:[%s5093_s1 + $0x488] ss:$16 sps:$4 sm:$0xff]   ;;  %v3607_v35 = vld [vmem:[%s5093_s1 + $0x4a4] ss:$16 sps:$4 sm:$0xff]  }
  0x5c   :  { %1307 = vmatprep.subr.bf16.mxu0 %v3523_v37  ;;  %1479 = vmatprep.subr.bf16.mxu1 %v3526_v38  ;;  %v3605_v37 = vld [vmem:[%s5093_s1 + $0x4a0] ss:$16 sps:$4 sm:$0xff]   ;;  %v3608_v38 = vld [vmem:[%s5093_s1 + $0x4a8] ss:$16 sps:$4 sm:$0xff]  }
  0x5f   :  { %1308 = vmatpush1.bf16.msra.mxu0 %v3521_v39  ;;  %1480 = vmatpush1.bf16.msra.mxu1 %v3524_v40  ;;  %v3613_v39 = vld [vmem:[%s5093_s1 + $0x4c4] ss:$16 sps:$4 sm:$0xff]   ;;  %v3616_v40 = vld [vmem:[%s5093_s1 + $0x4cc] ss:$16 sps:$4 sm:$0xff]  }
  0x60   :  { %1309 = vmatprep.subr.bf16.mxu0 %v3529_v41  ;;  %1481 = vmatprep.subr.bf16.mxu1 %v3532_v42  ;;  %v3611_v41 = vld [vmem:[%s5093_s1 + $0x4c0] ss:$16 sps:$4 sm:$0xff]   ;;  %v3614_v42 = vld [vmem:[%s5093_s1 + $0x4c8] ss:$16 sps:$4 sm:$0xff]  }
  0x63   :  { %1310 = vmatpush1.bf16.msra.mxu0 %v3527_v43  ;;  %1482 = vmatpush1.bf16.msra.mxu1 %v3530_v44  ;;  %v3619_v43 = vld [vmem:[%s5093_s1 + $0x4e4] ss:$16 sps:$4 sm:$0xff]   ;;  %v3622_v44 = vld [vmem:[%s5093_s1 + $0x4ec] ss:$16 sps:$4 sm:$0xff]  }
  0x64   :  { %1311 = vmatprep.subr.bf16.mxu0 %v3535_v45  ;;  %1483 = vmatprep.subr.bf16.mxu1 %v3538_v46  ;;  %v3617_v45 = vld [vmem:[%s5093_s1 + $0x4e0] ss:$16 sps:$4 sm:$0xff]   ;;  %v3620_v46 = vld [vmem:[%s5093_s1 + $0x4e8] ss:$16 sps:$4 sm:$0xff]  }
  0x67   :  { %1312 = vmatpush1.bf16.msra.mxu0 %v3533_v47  ;;  %1484 = vmatpush1.bf16.msra.mxu1 %v3536_v48  ;;  %v3625_v47 = vld [vmem:[%s5093_s1 + $0x504] ss:$16 sps:$4 sm:$0xff]   ;;  %v3628_v48 = vld [vmem:[%s5093_s1 + $0x50c] ss:$16 sps:$4 sm:$0xff]  }
  0x68   :  { %1313 = vmatprep.subr.bf16.mxu0 %v3541_v49  ;;  %1485 = vmatprep.subr.bf16.mxu1 %v3544_v50  ;;  %v3623_v49 = vld [vmem:[%s5093_s1 + $0x500] ss:$16 sps:$4 sm:$0xff]   ;;  %v3626_v50 = vld [vmem:[%s5093_s1 + $0x508] ss:$16 sps:$4 sm:$0xff]  }
  0x6b   :  { %1314 = vmatpush1.bf16.msra.mxu0 %v3539_v51  ;;  %1486 = vmatpush1.bf16.msra.mxu1 %v3542_v52  ;;  %v3631_v51 = vld [vmem:[%s5093_s1 + $0x524] ss:$16 sps:$4 sm:$0xff]   ;;  %v3634_v52 = vld [vmem:[%s5093_s1 + $0x52c] ss:$16 sps:$4 sm:$0xff]  }
  0x6c   :  { %1315 = vmatprep.subr.bf16.mxu0 %v3547_v53  ;;  %1487 = vmatprep.subr.bf16.mxu1 %v3550_v54  ;;  %v3629_v53 = vld [vmem:[%s5093_s1 + $0x520] ss:$16 sps:$4 sm:$0xff]   ;;  %v3632_v54 = vld [vmem:[%s5093_s1 + $0x528] ss:$16 sps:$4 sm:$0xff]  }
  0x6f   :  { %1316 = vmatpush1.bf16.msra.mxu0 %v3545_v55  ;;  %1488 = vmatpush1.bf16.msra.mxu1 %v3548_v56  ;;  %v3637_v55 = vld [vmem:[%s5093_s1 + $0x544] ss:$16 sps:$4 sm:$0xff]   ;;  %v3640_v56 = vld [vmem:[%s5093_s1 + $0x54c] ss:$16 sps:$4 sm:$0xff]  }
  0x70   :  { %1317 = vmatprep.subr.bf16.mxu0 %v3553_v57  ;;  %1489 = vmatprep.subr.bf16.mxu1 %v3556_v58  ;;  %v3635_v57 = vld [vmem:[%s5093_s1 + $0x540] ss:$16 sps:$4 sm:$0xff]   ;;  %v3638_v58 = vld [vmem:[%s5093_s1 + $0x548] ss:$16 sps:$4 sm:$0xff]  }
  0x73   :  { %1318 = vmatpush1.bf16.msra.mxu0 %v3551_v59  ;;  %1490 = vmatpush1.bf16.msra.mxu1 %v3554_v60  ;;  %v3643_v59 = vld [vmem:[%s5093_s1 + $0x564] ss:$16 sps:$4 sm:$0xff]   ;;  %v3646_v60 = vld [vmem:[%s5093_s1 + $0x56c] ss:$16 sps:$4 sm:$0xff]  }
  0x74   :  { %1319 = vmatprep.subr.bf16.mxu0 %v3559_v61  ;;  %1491 = vmatprep.subr.bf16.mxu1 %v3562_v62  ;;  %v3641_v61 = vld [vmem:[%s5093_s1 + $0x560] ss:$16 sps:$4 sm:$0xff]   ;;  %v3644_v62 = vld [vmem:[%s5093_s1 + $0x568] ss:$16 sps:$4 sm:$0xff]  }
  0x77   :  { %1320 = vmatpush1.bf16.msra.mxu0 %v3557_v63  ;;  %1492 = vmatpush1.bf16.msra.mxu1 %v3560_v0  ;;  %v3649_v63 = vld [vmem:[%s5093_s1 + $0x584] ss:$16 sps:$4 sm:$0xff]   ;;  %v3652_v0 = vld [vmem:[%s5093_s1 + $0x58c] ss:$16 sps:$4 sm:$0xff]  }
  0x78   :  { %1321 = vmatprep.subr.bf16.mxu0 %v3565_v1  ;;  %1493 = vmatprep.subr.bf16.mxu1 %v3568_v2  ;;  %v3647_v1 = vld [vmem:[%s5093_s1 + $0x580] ss:$16 sps:$4 sm:$0xff]   ;;  %v3650_v2 = vld [vmem:[%s5093_s1 + $0x588] ss:$16 sps:$4 sm:$0xff]  }
  0x7b   :  { %1322 = vmatpush1.bf16.msra.mxu0 %v3563_v3  ;;  %1494 = vmatpush1.bf16.msra.mxu1 %v3566_v4  ;;  %v3655_v3 = vld [vmem:[%s5093_s1 + $0x5a4] ss:$16 sps:$4 sm:$0xff]   ;;  %v3658_v4 = vld [vmem:[%s5093_s1 + $0x5ac] ss:$16 sps:$4 sm:$0xff]  }
  0x7c   :  { %1323 = vmatprep.subr.bf16.mxu0 %v3571_v5  ;;  %1495 = vmatprep.subr.bf16.mxu1 %v3574_v6  ;;  %v3653_v5 = vld [vmem:[%s5093_s1 + $0x5a0] ss:$16 sps:$4 sm:$0xff]   ;;  %v3656_v6 = vld [vmem:[%s5093_s1 + $0x5a8] ss:$16 sps:$4 sm:$0xff]  }
  0x7f   :  { %1324 = vmatpush1.bf16.msra.mxu0 %v3569_v7  ;;  %1496 = vmatpush1.bf16.msra.mxu1 %v3572_v8  ;;  %v3661_v7 = vld [vmem:[%s5093_s1 + $0x5c4] ss:$16 sps:$4 sm:$0xff]   ;;  %v3664_v8 = vld [vmem:[%s5093_s1 + $0x5cc] ss:$16 sps:$4 sm:$0xff]  }
  0x80   :  { %1336 = vmatprep.subr.bf16.mxu0 %v3577_v9  ;;  %1508 = vmatprep.subr.bf16.mxu1 %v3580_v12  ;;  %v3659_v9 = vld [vmem:[%s5093_s1 + $0x5c0] ss:$16 sps:$4 sm:$0xff]   ;;  %v3670_v12 = vld [vmem:[%s5093_s1 + $0x5ec] ss:$16 sps:$4 sm:$0xff]  }
  0x82   :  { %1326 = vmatmul.mubr.bf16.vlgmr.msra.gmra.mrb[0].mxu0 %v43_v15  ;;  %1498 = vmatmul.mubr.bf16.vlgmr.msra.gmra.mrb[0].mxu1 %v43_v15  ;;  %v31_v15 = vld [vmem:[%s5094_s0 + $0x20] sm:$0xff] }
  0x83   :  { %1337 = vmatpush1.bf16.msra.mxu0 %v3575_v13  ;;  %1509 = vmatpush1.bf16.msra.mxu1 %v3578_v14  ;;  %v3665_v13 = vld [vmem:[%s5093_s1 + $0x5e0] ss:$16 sps:$4 sm:$0xff]   ;;  %v3668_v14 = vld [vmem:[%s5093_s1 + $0x5e8] ss:$16 sps:$4 sm:$0xff]  }
  0x84   :  { %1338 = vmatprep.subr.bf16.mxu0 %v3583_v16  ;;  %1510 = vmatprep.subr.bf16.mxu1 %v3586_v17  ;;  %v38_v16 = vld [vmem:[%s5094_s0 + $0x58] sm:$0xff]  ;;  %v3673_v17 = vld [vmem:[%s5093_s1 + $0x604] ss:$16 sps:$4 sm:$0xff]  }
  0x85   :  { %1368 = vmatprep.mubr.bf16.mxu0 %v46_v23  ;;  %1540 = vmatprep.mubr.bf16.mxu1 %v46_v23  ;;  %v45_v21 = vpack.c.bf16 %v38_v16, %v31_v15  ;;  %v3682_v23 = vld [vmem:[%s5095_s3 + $0xc] ss:$16 sps:$4 sm:$0xff]   ;;  %v3755_v16 = vld [vmem:[%s5095_s3 + $0x1a0] ss:$16 sps:$4 sm:$0xff]  }
  0x86   :  { %v3760_v15 = vld [vmem:[%s5095_s3 + $0x1ac] ss:$16 sps:$4 sm:$0xff]  }
  0x87   :  { %1339 = vmatpush1.bf16.msra.mxu0 %v3581_v19  ;;  %1511 = vmatpush1.bf16.msra.mxu1 %v3584_v20  ;;  %v3671_v19 = vld [vmem:[%s5093_s1 + $0x600] ss:$16 sps:$4 sm:$0xff]   ;;  %v3674_v20 = vld [vmem:[%s5093_s1 + $0x608] ss:$16 sps:$4 sm:$0xff]  }
  0x88   :  { %1340 = vmatprep.subr.bf16.mxu0 %v3589_v22  ;;  %1512 = vmatprep.subr.bf16.mxu1 %v3592_v24  ;;  %v3679_v22 = vld [vmem:[%s5095_s3 + $0x4] ss:$16 sps:$4 sm:$0xff]   ;;  %v3901_v24 = vmov 0  }
  0x8b   :  { %1341 = vmatpush1.bf16.msra.mxu0 %v3587_v25  ;;  %1513 = vmatpush1.bf16.msra.mxu1 %v3590_v26  ;;  %v33_v25 = vld [vmem:[%s5094_s0 + $0x30] sm:$0xff]  ;;  %v40_v26 = vld [vmem:[%s5094_s0 + $0x68] sm:$0xff] }
  0x8c   :  { %1342 = vmatprep.subr.bf16.mxu0 %v3595_v27  ;;  %1514 = vmatprep.subr.bf16.mxu1 %v3598_v28  ;;  %v47_v27 = vpack.c.bf16 %v40_v26, %v33_v25  ;;  %v3677_v28 = vld [vmem:[%s5095_s3] ss:$16 sps:$4 sm:$0xff]   ;;  %v3770_v25 = vld [vmem:[%s5095_s3 + $0x1e8] ss:$16 sps:$4 sm:$0xff]   ;;  %v3775_v26 = vld [vmem:[%s5095_s3 + $0x204] ss:$16 sps:$4 sm:$0xff]  }
  0x8f   :  { %1343 = vmatpush1.bf16.msra.mxu0 %v3593_v29  ;;  %1515 = vmatpush1.bf16.msra.mxu1 %v3596_v30  ;;  %v3680_v29 = vld [vmem:[%s5095_s3 + $0x8] ss:$16 sps:$4 sm:$0xff]   ;;  %v3685_v30 = vld [vmem:[%s5095_s3 + $0x24] ss:$16 sps:$4 sm:$0xff]  }
  0x90   :  { %1344 = vmatprep.subr.bf16.mxu0 %v3601_v31  ;;  %1516 = vmatprep.subr.bf16.mxu1 %v3604_v32  ;;  %v3688_v31 = vld [vmem:[%s5095_s3 + $0x2c] ss:$16 sps:$4 sm:$0xff]   ;;  %v3683_v32 = vld [vmem:[%s5095_s3 + $0x20] ss:$16 sps:$4 sm:$0xff]  }
  0x93   :  { %1345 = vmatpush1.bf16.msra.mxu0 %v3599_v33  ;;  %1517 = vmatpush1.bf16.msra.mxu1 %v3602_v34  ;;  %v3686_v33 = vld [vmem:[%s5095_s3 + $0x28] ss:$16 sps:$4 sm:$0xff]   ;;  %v3691_v34 = vld [vmem:[%s5095_s3 + $0x44] ss:$16 sps:$4 sm:$0xff]  }
  0x94   :  { %1346 = vmatprep.subr.bf16.mxu0 %v3607_v35  ;;  %1518 = vmatprep.subr.bf16.mxu1 %v3610_v36  ;;  %v3694_v35 = vld [vmem:[%s5095_s3 + $0x4c] ss:$16 sps:$4 sm:$0xff]   ;;  %v3689_v36 = vld [vmem:[%s5095_s3 + $0x40] ss:$16 sps:$4 sm:$0xff]  }
  0x97   :  { %1347 = vmatpush1.bf16.msra.mxu0 %v3605_v37  ;;  %1519 = vmatpush1.bf16.msra.mxu1 %v3608_v38  ;;  %v3692_v37 = vld [vmem:[%s5095_s3 + $0x48] ss:$16 sps:$4 sm:$0xff]   ;;  %v3697_v38 = vld [vmem:[%s5095_s3 + $0x64] ss:$16 sps:$4 sm:$0xff]  }
  0x98   :  { %1348 = vmatprep.subr.bf16.mxu0 %v3613_v39  ;;  %1520 = vmatprep.subr.bf16.mxu1 %v3616_v40  ;;  %v3700_v39 = vld [vmem:[%s5095_s3 + $0x6c] ss:$16 sps:$4 sm:$0xff]   ;;  %v3695_v40 = vld [vmem:[%s5095_s3 + $0x60] ss:$16 sps:$4 sm:$0xff]  }
  0x9b   :  { %1349 = vmatpush1.bf16.msra.mxu0 %v3611_v41  ;;  %1521 = vmatpush1.bf16.msra.mxu1 %v3614_v42  ;;  %v3698_v41 = vld [vmem:[%s5095_s3 + $0x68] ss:$16 sps:$4 sm:$0xff]   ;;  %v3703_v42 = vld [vmem:[%s5095_s3 + $0x84] ss:$16 sps:$4 sm:$0xff]  }
  0x9c   :  { %1350 = vmatprep.subr.bf16.mxu0 %v3619_v43  ;;  %1522 = vmatprep.subr.bf16.mxu1 %v3622_v44  ;;  %v3706_v43 = vld [vmem:[%s5095_s3 + $0x8c] ss:$16 sps:$4 sm:$0xff]   ;;  %v3701_v44 = vld [vmem:[%s5095_s3 + $0x80] ss:$16 sps:$4 sm:$0xff]  }
  0x9f   :  { %1351 = vmatpush1.bf16.msra.mxu0 %v3617_v45  ;;  %1523 = vmatpush1.bf16.msra.mxu1 %v3620_v46  ;;  %v3704_v45 = vld [vmem:[%s5095_s3 + $0x88] ss:$16 sps:$4 sm:$0xff]   ;;  %v3709_v46 = vld [vmem:[%s5095_s3 + $0xa4] ss:$16 sps:$4 sm:$0xff]  }
  0xa0   :  { %1352 = vmatprep.subr.bf16.mxu0 %v3625_v47  ;;  %1524 = vmatprep.subr.bf16.mxu1 %v3628_v48  ;;  %v3712_v47 = vld [vmem:[%s5095_s3 + $0xac] ss:$16 sps:$4 sm:$0xff]   ;;  %v3707_v48 = vld [vmem:[%s5095_s3 + $0xa0] ss:$16 sps:$4 sm:$0xff]  }
  0xa3   :  { %1353 = vmatpush1.bf16.msra.mxu0 %v3623_v49  ;;  %1525 = vmatpush1.bf16.msra.mxu1 %v3626_v50  ;;  %v3710_v49 = vld [vmem:[%s5095_s3 + $0xa8] ss:$16 sps:$4 sm:$0xff]   ;;  %v3715_v50 = vld [vmem:[%s5095_s3 + $0xc4] ss:$16 sps:$4 sm:$0xff]  }
  0xa4   :  { %1354 = vmatprep.subr.bf16.mxu0 %v3631_v51  ;;  %1526 = vmatprep.subr.bf16.mxu1 %v3634_v52  ;;  %v3718_v51 = vld [vmem:[%s5095_s3 + $0xcc] ss:$16 sps:$4 sm:$0xff]   ;;  %v3713_v52 = vld [vmem:[%s5095_s3 + $0xc0] ss:$16 sps:$4 sm:$0xff]  }
  0xa7   :  { %1355 = vmatpush1.bf16.msra.mxu0 %v3629_v53  ;;  %1527 = vmatpush1.bf16.msra.mxu1 %v3632_v54  ;;  %v3716_v53 = vld [vmem:[%s5095_s3 + $0xc8] ss:$16 sps:$4 sm:$0xff]   ;;  %v3721_v54 = vld [vmem:[%s5095_s3 + $0xe4] ss:$16 sps:$4 sm:$0xff]  }
  0xa8   :  { %1356 = vmatprep.subr.bf16.mxu0 %v3637_v55  ;;  %1528 = vmatprep.subr.bf16.mxu1 %v3640_v56  ;;  %v3724_v55 = vld [vmem:[%s5095_s3 + $0xec] ss:$16 sps:$4 sm:$0xff]   ;;  %v3719_v56 = vld [vmem:[%s5095_s3 + $0xe0] ss:$16 sps:$4 sm:$0xff]  }
  0xab   :  { %1357 = vmatpush1.bf16.msra.mxu0 %v3635_v57  ;;  %1529 = vmatpush1.bf16.msra.mxu1 %v3638_v58  ;;  %v3722_v57 = vld [vmem:[%s5095_s3 + $0xe8] ss:$16 sps:$4 sm:$0xff]   ;;  %v3727_v58 = vld [vmem:[%s5095_s3 + $0x104] ss:$16 sps:$4 sm:$0xff]  }
  0xac   :  { %1358 = vmatprep.subr.bf16.mxu0 %v3643_v59  ;;  %1530 = vmatprep.subr.bf16.mxu1 %v3646_v60  ;;  %v3730_v59 = vld [vmem:[%s5095_s3 + $0x10c] ss:$16 sps:$4 sm:$0xff]   ;;  %v3725_v60 = vld [vmem:[%s5095_s3 + $0x100] ss:$16 sps:$4 sm:$0xff]  }
  0xaf   :  { %1359 = vmatpush1.bf16.msra.mxu0 %v3641_v61  ;;  %1531 = vmatpush1.bf16.msra.mxu1 %v3644_v62  ;;  %v3728_v61 = vld [vmem:[%s5095_s3 + $0x108] ss:$16 sps:$4 sm:$0xff]   ;;  %v3733_v62 = vld [vmem:[%s5095_s3 + $0x124] ss:$16 sps:$4 sm:$0xff]  }
  0xb0   :  { %1360 = vmatprep.subr.bf16.mxu0 %v3649_v63  ;;  %1532 = vmatprep.subr.bf16.mxu1 %v3652_v0  ;;  %v3736_v63 = vld [vmem:[%s5095_s3 + $0x12c] ss:$16 sps:$4 sm:$0xff]   ;;  %v3731_v0 = vld [vmem:[%s5095_s3 + $0x120] ss:$16 sps:$4 sm:$0xff]  }
  0xb3   :  { %1361 = vmatpush1.bf16.msra.mxu0 %v3647_v1  ;;  %1533 = vmatpush1.bf16.msra.mxu1 %v3650_v2  ;;  %v3734_v1 = vld [vmem:[%s5095_s3 + $0x128] ss:$16 sps:$4 sm:$0xff]   ;;  %v3739_v2 = vld [vmem:[%s5095_s3 + $0x144] ss:$16 sps:$4 sm:$0xff]  }
  0xb4   :  { %1362 = vmatprep.subr.bf16.mxu0 %v3655_v3  ;;  %1534 = vmatprep.subr.bf16.mxu1 %v3658_v4  ;;  %v3742_v3 = vld [vmem:[%s5095_s3 + $0x14c] ss:$16 sps:$4 sm:$0xff]   ;;  %v3737_v4 = vld [vmem:[%s5095_s3 + $0x140] ss:$16 sps:$4 sm:$0xff]  }
  0xb7   :  { %1363 = vmatpush1.bf16.msra.mxu0 %v3653_v5  ;;  %1535 = vmatpush1.bf16.msra.mxu1 %v3656_v6  ;;  %v3740_v5 = vld [vmem:[%s5095_s3 + $0x148] ss:$16 sps:$4 sm:$0xff]   ;;  %v3745_v6 = vld [vmem:[%s5095_s3 + $0x164] ss:$16 sps:$4 sm:$0xff]  }
  0xb8   :  { %1364 = vmatprep.subr.bf16.mxu0 %v3661_v7  ;;  %1536 = vmatprep.subr.bf16.mxu1 %v3664_v8  ;;  %v3748_v7 = vld [vmem:[%s5095_s3 + $0x16c] ss:$16 sps:$4 sm:$0xff]   ;;  %v3743_v8 = vld [vmem:[%s5095_s3 + $0x160] ss:$16 sps:$4 sm:$0xff]  }
  0xbb   :  { %1365 = vmatpush1.bf16.msra.mxu0 %v3659_v9  ;;  %1537 = vmatpush1.bf16.msra.mxu1 %v3662_v10  ;;  %v3746_v9 = vld [vmem:[%s5095_s3 + $0x168] ss:$16 sps:$4 sm:$0xff]   ;;  %v3751_v10 = vld [vmem:[%s5095_s3 + $0x184] ss:$16 sps:$4 sm:$0xff]  }
  0xbc   :  { %1366 = vmatprep.subr.bf16.mxu0 %v3667_v11  ;;  %1538 = vmatprep.subr.bf16.mxu1 %v3670_v12  ;;  %v3754_v11 = vld [vmem:[%s5095_s3 + $0x18c] ss:$16 sps:$4 sm:$0xff]   ;;  %v3749_v12 = vld [vmem:[%s5095_s3 + $0x180] ss:$16 sps:$4 sm:$0xff]  }
  0xbf   :  { %1367 = vmatpush1.bf16.msra.mxu0 %v3665_v13  ;;  %1539 = vmatpush1.bf16.msra.mxu1 %v3668_v14  ;;  %v3752_v13 = vld [vmem:[%s5095_s3 + $0x188] ss:$16 sps:$4 sm:$0xff]   ;;  %v3757_v14 = vld [vmem:[%s5095_s3 + $0x1a4] ss:$16 sps:$4 sm:$0xff]  }
  0xc0   :  { %1379 = vmatprep.subr.bf16.mxu0 %v3673_v17  ;;  %1551 = vmatprep.subr.bf16.mxu1 %v3676_v18  ;;  %v3758_v17 = vld [vmem:[%s5095_s3 + $0x1a8] ss:$16 sps:$4 sm:$0xff]   ;;  %v3763_v18 = vld [vmem:[%s5095_s3 + $0x1c4] ss:$16 sps:$4 sm:$0xff]  }
  0xc2   :  { %1369 = vmatmul.mubr.bf16.vlgmr.msra.gmra.mrb[0].mxu0 %v45_v21  ;;  %1541 = vmatmul.mubr.bf16.vlgmr.msra.gmra.mrb[0].mxu1 %v45_v21  ;;  %v3764_v21 = vld [vmem:[%s5095_s3 + $0x1c8] ss:$16 sps:$4 sm:$0xff]  }
  0xc3   :  { %1380 = vmatpush1.bf16.msra.mxu0 %v3671_v19  ;;  %1552 = vmatpush1.bf16.msra.mxu1 %v3674_v20  ;;  %v3766_v19 = vld [vmem:[%s5095_s3 + $0x1cc] ss:$16 sps:$4 sm:$0xff]   ;;  %v3761_v20 = vld [vmem:[%s5095_s3 + $0x1c0] ss:$16 sps:$4 sm:$0xff]  }
  0xc4   :  { %1411 = vmatprep.mubr.bf16.mxu0 %v3901_v24  ;;  %1583 = vmatprep.mubr.bf16.mxu1 %v3901_v24  ;;  %v3767_v24 = vld [vmem:[%s5095_s3 + $0x1e0] ss:$16 sps:$4 sm:$0xff]  }
  0xc5   :  { %2396 = vmatprep.subr.bf16.mxu0 %v3679_v22  ;;  %2482 = vmatprep.subr.bf16.mxu1 %v3682_v23  ;;  %v3769_v22 = vld [vmem:[%s5095_s3 + $0x1e4] ss:$16 sps:$4 sm:$0xff]   ;;  %v3772_v23 = vld [vmem:[%s5095_s3 + $0x1ec] ss:$16 sps:$4 sm:$0xff]  }
  0xce   :  { %3127 = vmatmul.mubr.msk.bf16.vlgmr.msra.gmra.mrb[0].mxu0 %vm1246_vm0, %v47_v27  ;;  %3128 = vmatmul.mubr.msk.bf16.vlgmr.msra.gmra.mrb[0].mxu1 %vm1246_vm0, %v47_v27  ;;  %v3778_v27 = vld [vmem:[%s5095_s3 + $0x20c] ss:$16 sps:$4 sm:$0xff]  }
  0xcf   :  { %2397 = vmatpush1.bf16.msra.mxu0 %v3677_v28  ;;  %2483 = vmatpush1.bf16.msra.mxu1 %v3680_v29  ;;  %v246_v28 = vlaneseq }
  0xd0   :  { %2398 = vmatprep.subr.bf16.mxu0 %v3685_v30  ;;  %2484 = vmatprep.subr.bf16.mxu1 %v3688_v31 }
  0xd1   :  { %v4770_v29 = vshrl.u32 %v246_v28, 7  ;;  %v3812_v28 = vld [vmem:[%s5095_s3 + $0x2c8] ss:$16 sps:$4 sm:$0xff]  }
  0xd3   :  { %2399 = vmatpush1.bf16.msra.mxu0 %v3683_v32  ;;  %2485 = vmatpush1.bf16.msra.mxu1 %v3686_v33  ;;  %v248_v30 = vsub.s32 0, %v4770_v29  ;;  %v256_v31 = vsub.s32 2, %v4770_v29  ;;  %v244_v32 = vld [vmem:[%s5097_s2] sm:$0xf]  ;;  %v252_v33 = vsub.s32 1, %v4770_v29 }
  0xd4   :  { %2400 = vmatprep.subr.bf16.mxu0 %v3691_v34  ;;  %2486 = vmatprep.subr.bf16.mxu1 %v3694_v35  ;;  %v260_v34 = vsub.s32 3, %v4770_v29 }
  0xd5   :  { %v249_v35 = vrot.slane %v244_v32, %v248_v30 }
  0xd7   :  { %2401 = vmatpush1.bf16.msra.mxu0 %v3689_v36  ;;  %2487 = vmatpush1.bf16.msra.mxu1 %v3692_v37  ;;  %v257_v36 = vrot.slane %v244_v32, %v256_v31  ;;  %v253_v37 = vrot.slane %v244_v32, %v252_v33 }
  0xd8   :  { %2402 = vmatprep.subr.bf16.mxu0 %v3697_v38  ;;  %2488 = vmatprep.subr.bf16.mxu1 %v3700_v39  ;;  %v261_v38 = vrot.slane %v244_v32, %v260_v34  ;;  %v3817_v32 = vld [vmem:[%s5095_s3 + $0x2e4] ss:$16 sps:$4 sm:$0xff]  }
  0xdb   :  { %2403 = vmatpush1.bf16.msra.mxu0 %v3695_v40  ;;  %2489 = vmatpush1.bf16.msra.mxu1 %v3698_v41 }
  0xdc   :  { %2404 = vmatprep.subr.bf16.mxu0 %v3703_v42  ;;  %2490 = vmatprep.subr.bf16.mxu1 %v3706_v43 }
  0xdf   :  { %2405 = vmatpush1.bf16.msra.mxu0 %v3701_v44  ;;  %2491 = vmatpush1.bf16.msra.mxu1 %v3704_v45 }
  0xe0   :  { %2406 = vmatprep.subr.bf16.mxu0 %v3709_v46  ;;  %2492 = vmatprep.subr.bf16.mxu1 %v3712_v47 }
  0xe3   :  { %2407 = vmatpush1.bf16.msra.mxu0 %v3707_v48  ;;  %2493 = vmatpush1.bf16.msra.mxu1 %v3710_v49 }
  0xe4   :  { %2408 = vmatprep.subr.bf16.mxu0 %v3715_v50  ;;  %2494 = vmatprep.subr.bf16.mxu1 %v3718_v51 }
  0xe7   :  { %2409 = vmatpush1.bf16.msra.mxu0 %v3713_v52  ;;  %2495 = vmatpush1.bf16.msra.mxu1 %v3716_v53 }
  0xe8   :  { %2410 = vmatprep.subr.bf16.mxu0 %v3721_v54  ;;  %2496 = vmatprep.subr.bf16.mxu1 %v3724_v55 }
  0xeb   :  { %2411 = vmatpush1.bf16.msra.mxu0 %v3719_v56  ;;  %2497 = vmatpush1.bf16.msra.mxu1 %v3722_v57 }
  0xec   :  { %2412 = vmatprep.subr.bf16.mxu0 %v3727_v58  ;;  %2498 = vmatprep.subr.bf16.mxu1 %v3730_v59 }
  0xef   :  { %2413 = vmatpush1.bf16.msra.mxu0 %v3725_v60  ;;  %2499 = vmatpush1.bf16.msra.mxu1 %v3728_v61 }
  0xf0   :  { %2414 = vmatprep.subr.bf16.mxu0 %v3733_v62  ;;  %2500 = vmatprep.subr.bf16.mxu1 %v3736_v63 }
  0xf3   :  { %2415 = vmatpush1.bf16.msra.mxu0 %v3731_v0  ;;  %2501 = vmatpush1.bf16.msra.mxu1 %v3734_v1 }
  0xf4   :  { %2416 = vmatprep.subr.bf16.mxu0 %v3739_v2  ;;  %2502 = vmatprep.subr.bf16.mxu1 %v3742_v3  ;;  %v3773_v3 = vld [vmem:[%s5095_s3 + $0x200] ss:$16 sps:$4 sm:$0xff]  }
  0xf7   :  { %2417 = vmatpush1.bf16.msra.mxu0 %v3737_v4  ;;  %2503 = vmatpush1.bf16.msra.mxu1 %v3740_v5  ;;  %v3776_v4 = vld [vmem:[%s5095_s3 + $0x208] ss:$16 sps:$4 sm:$0xff]   ;;  %v3781_v5 = vld [vmem:[%s5095_s3 + $0x224] ss:$16 sps:$4 sm:$0xff]  }
  0xf8   :  { %2418 = vmatprep.subr.bf16.mxu0 %v3745_v6  ;;  %2504 = vmatprep.subr.bf16.mxu1 %v3748_v7  ;;  %v3784_v6 = vld [vmem:[%s5095_s3 + $0x22c] ss:$16 sps:$4 sm:$0xff]   ;;  %v3779_v7 = vld [vmem:[%s5095_s3 + $0x220] ss:$16 sps:$4 sm:$0xff]  }
  0xfb   :  { %2419 = vmatpush1.bf16.msra.mxu0 %v3743_v8  ;;  %2505 = vmatpush1.bf16.msra.mxu1 %v3746_v9  ;;  %v3782_v8 = vld [vmem:[%s5095_s3 + $0x228] ss:$16 sps:$4 sm:$0xff]   ;;  %v3787_v9 = vld [vmem:[%s5095_s3 + $0x244] ss:$16 sps:$4 sm:$0xff]  }
  0xfc   :  { %2420 = vmatprep.subr.bf16.mxu0 %v3751_v10  ;;  %2506 = vmatprep.subr.bf16.mxu1 %v3754_v11  ;;  %v3790_v10 = vld [vmem:[%s5095_s3 + $0x24c] ss:$16 sps:$4 sm:$0xff]   ;;  %v3785_v11 = vld [vmem:[%s5095_s3 + $0x240] ss:$16 sps:$4 sm:$0xff]  }
  0xff   :  { %2421 = vmatpush1.bf16.msra.mxu0 %v3749_v12  ;;  %2507 = vmatpush1.bf16.msra.mxu1 %v3752_v13  ;;  %v3788_v12 = vld [vmem:[%s5095_s3 + $0x248] ss:$16 sps:$4 sm:$0xff]   ;;  %v3793_v13 = vld [vmem:[%s5095_s3 + $0x264] ss:$16 sps:$4 sm:$0xff]  }
 0x100   :  { %2422 = vmatprep.subr.bf16.mxu0 %v3757_v14  ;;  %2508 = vmatprep.subr.bf16.mxu1 %v3760_v15  ;;  %v3796_v14 = vld [vmem:[%s5095_s3 + $0x26c] ss:$16 sps:$4 sm:$0xff]   ;;  %v3791_v15 = vld [vmem:[%s5095_s3 + $0x260] ss:$16 sps:$4 sm:$0xff]  }
 0x103   :  { %2423 = vmatpush1.bf16.msra.mxu0 %v3755_v16  ;;  %2509 = vmatpush1.bf16.msra.mxu1 %v3758_v17  ;;  %v3794_v16 = vld [vmem:[%s5095_s3 + $0x268] ss:$16 sps:$4 sm:$0xff]   ;;  %v3799_v17 = vld [vmem:[%s5095_s3 + $0x284] ss:$16 sps:$4 sm:$0xff]  }
 0x104   :  { %2424 = vmatprep.subr.bf16.mxu0 %v3763_v18  ;;  %2510 = vmatprep.subr.bf16.mxu1 %v3766_v19  ;;  %v3802_v18 = vld [vmem:[%s5095_s3 + $0x28c] ss:$16 sps:$4 sm:$0xff]   ;;  %v3797_v19 = vld [vmem:[%s5095_s3 + $0x280] ss:$16 sps:$4 sm:$0xff]  }
 0x107   :  { %2425 = vmatpush1.bf16.msra.mxu0 %v3761_v20  ;;  %2511 = vmatpush1.bf16.msra.mxu1 %v3764_v21  ;;  %v3800_v20 = vld [vmem:[%s5095_s3 + $0x288] ss:$16 sps:$4 sm:$0xff]   ;;  %v3805_v21 = vld [vmem:[%s5095_s3 + $0x2a4] ss:$16 sps:$4 sm:$0xff]  }
 0x108   :  { %2426 = vmatprep.subr.bf16.mxu0 %v3769_v22  ;;  %2512 = vmatprep.subr.bf16.mxu1 %v3772_v23  ;;  %v3808_v22 = vld [vmem:[%s5095_s3 + $0x2ac] ss:$16 sps:$4 sm:$0xff]   ;;  %v3803_v23 = vld [vmem:[%s5095_s3 + $0x2a0] ss:$16 sps:$4 sm:$0xff]  }
 0x10b   :  { %2427 = vmatpush1.bf16.msra.mxu0 %v3767_v24  ;;  %2513 = vmatpush1.bf16.msra.mxu1 %v3770_v25  ;;  %v3806_v24 = vld [vmem:[%s5095_s3 + $0x2a8] ss:$16 sps:$4 sm:$0xff]   ;;  %v3811_v25 = vld [vmem:[%s5095_s3 + $0x2c4] ss:$16 sps:$4 sm:$0xff]  }
 0x10c   :  { %2439 = vmatprep.subr.bf16.mxu0 %v3775_v26  ;;  %2525 = vmatprep.subr.bf16.mxu1 %v3778_v27  ;;  %v3814_v26 = vld [vmem:[%s5095_s3 + $0x2cc] ss:$16 sps:$4 sm:$0xff]   ;;  %v3809_v27 = vld [vmem:[%s5095_s3 + $0x2c0] ss:$16 sps:$4 sm:$0xff]  }
 0x1a1   :  { %v1413_v39 = vpop.f32.mrb[0].mxu0  ;;  %v1585_v40 = vpop.f32.mrb[0].mxu1 }
 0x1a2   :  { %v3334_v41 = vadd.f32 %v1413_v39, %v249_v35  ;;  %v3338_v42 = vadd.f32 %v1585_v40, %v257_v36  ;;  %v1415_v43 = vpop.f32.mrb[1].mxu0  ;;  %v1587_v44 = vpop.f32.mrb[1].mxu1  ;;  %v3826_v39 = vld [vmem:[%s5095_s3 + $0x30c] ss:$16 sps:$4 sm:$0xff]   ;;  %v3821_v40 = vld [vmem:[%s5095_s3 + $0x300] ss:$16 sps:$4 sm:$0xff]  }
 0x1a3   :  { %v3335_v45 = vadd.f32 %v1415_v43, %v253_v37  ;;  %v3339_v46 = vadd.f32 %v1587_v44, %v261_v38  ;;  %v1417_v47 = vpop.f32.mrb[2].mxu0  ;;  %v1589_v48 = vpop.f32.mrb[2].mxu1  ;;  %v3832_v43 = vld [vmem:[%s5095_s3 + $0x32c] ss:$16 sps:$4 sm:$0xff]   ;;  %v3827_v44 = vld [vmem:[%s5095_s3 + $0x320] ss:$16 sps:$4 sm:$0xff]  }
 0x1a4   :  { %v3336_v49 = vadd.f32 %v1417_v47, %v249_v35  ;;  %v3340_v50 = vadd.f32 %v1589_v48, %v257_v36  ;;  %v1419_v51 = vpop.f32.mrb[3].mxu0  ;;  %v1591_v52 = vpop.f32.mrb[3].mxu1  ;;  %v1594_v55 = vmax.f32 %v3334_v41, 0.0  ;;  %v1596_v56 = vmax.f32 %v3338_v42, 0.0  ;;  %v3820_v35 = vld [vmem:[%s5095_s3 + $0x2ec] ss:$16 sps:$4 sm:$0xff]  }
 0x1a5   :  { %v3337_v53 = vadd.f32 %v1419_v51, %v253_v37  ;;  %v3341_v54 = vadd.f32 %v1591_v52, %v261_v38  ;;  %v1595_v59 = vmax.f32 %v3335_v45, 0.0  ;;  %v1597_v60 = vmax.f32 %v3339_v46, 0.0  ;;  %v3815_v36 = vld [vmem:[%s5095_s3 + $0x2e0] ss:$16 sps:$4 sm:$0xff]   ;;  %v3818_v37 = vld [vmem:[%s5095_s3 + $0x2e8] ss:$16 sps:$4 sm:$0xff]  }
 0x1a6   :  { %v1598_v57 = vmax.f32 %v3336_v49, 0.0  ;;  %v1600_v58 = vmax.f32 %v3340_v50, 0.0  ;;  %v3823_v38 = vld [vmem:[%s5095_s3 + $0x304] ss:$16 sps:$4 sm:$0xff]   ;;  %v3824_v41 = vld [vmem:[%s5095_s3 + $0x308] ss:$16 sps:$4 sm:$0xff]  }
 0x1a7   :  { %v1599_v61 = vmax.f32 %v3337_v53, 0.0  ;;  %v1601_v62 = vmax.f32 %v3341_v54, 0.0  ;;  %v3829_v42 = vld [vmem:[%s5095_s3 + $0x324] ss:$16 sps:$4 sm:$0xff]   ;;  %v3830_v45 = vld [vmem:[%s5095_s3 + $0x328] ss:$16 sps:$4 sm:$0xff]  }
 0x1a8   :  { %v1602_v63 = vpack.c.bf16 %v1598_v57, %v1594_v55  ;;  %v4787_v0 = vpack.c.bf16 %v1600_v58, %v1596_v56  ;;  %v3835_v46 = vld [vmem:[%s5095_s3 + $0x344] ss:$16 sps:$4 sm:$0xff]   ;;  %v3838_v47 = vld [vmem:[%s5095_s3 + $0x34c] ss:$16 sps:$4 sm:$0xff]   ;;  %v3833_v48 = vld [vmem:[%s5095_s3 + $0x340] ss:$16 sps:$4 sm:$0xff]  }
 0x1a9   :  { %v1603_v1 = vpack.c.bf16 %v1599_v61, %v1595_v59  ;;  %v1605_v2 = vpack.c.bf16 %v1601_v62, %v1597_v60  ;;  %v3836_v49 = vld [vmem:[%s5095_s3 + $0x348] ss:$16 sps:$4 sm:$0xff]   ;;  %v3841_v50 = vld [vmem:[%s5095_s3 + $0x364] ss:$16 sps:$4 sm:$0xff]   ;;  %v3844_v51 = vld [vmem:[%s5095_s3 + $0x36c] ss:$16 sps:$4 sm:$0xff]  }
 0x1aa   :  { %v3839_v52 = vld [vmem:[%s5095_s3 + $0x360] ss:$16 sps:$4 sm:$0xff]   ;;  %v3842_v53 = vld [vmem:[%s5095_s3 + $0x368] ss:$16 sps:$4 sm:$0xff]   ;;  %v3847_v54 = vld [vmem:[%s5095_s3 + $0x384] ss:$16 sps:$4 sm:$0xff]  }
 0x1ab   :  { %2428 = vmatprep.mubr.bf16.mxu0 %v1603_v1  ;;  %2514 = vmatprep.mubr.bf16.mxu1 %v1603_v1  ;;  %v3850_v55 = vld [vmem:[%s5095_s3 + $0x38c] ss:$16 sps:$4 sm:$0xff]   ;;  %v3845_v56 = vld [vmem:[%s5095_s3 + $0x380] ss:$16 sps:$4 sm:$0xff]   ;;  %v3848_v57 = vld [vmem:[%s5095_s3 + $0x388] ss:$16 sps:$4 sm:$0xff]  }
 0x1ac   :  { %2429 = vmatmul.mubr.bf16.vlgmr.msra.gmra.mrb[4].mxu0 %v1602_v63  ;;  %2515 = vmatmul.mubr.bf16.vlgmr.msra.gmra.mrb[4].mxu1 %v1602_v63  ;;  %v3853_v58 = vld [vmem:[%s5095_s3 + $0x3a4] ss:$16 sps:$4 sm:$0xff]   ;;  %v3856_v59 = vld [vmem:[%s5095_s3 + $0x3ac] ss:$16 sps:$4 sm:$0xff]   ;;  %v3851_v60 = vld [vmem:[%s5095_s3 + $0x3a0] ss:$16 sps:$4 sm:$0xff]  }
 0x1ad   :  { %2440 = vmatpush1.bf16.msra.mxu0 %v3773_v3  ;;  %2526 = vmatpush1.bf16.msra.mxu1 %v3776_v4  ;;  %v3854_v61 = vld [vmem:[%s5095_s3 + $0x3a8] ss:$16 sps:$4 sm:$0xff]   ;;  %v3859_v62 = vld [vmem:[%s5095_s3 + $0x3c4] ss:$16 sps:$4 sm:$0xff]   ;;  %v3862_v63 = vld [vmem:[%s5095_s3 + $0x3cc] ss:$16 sps:$4 sm:$0xff]  }
 0x1ae   :  { %2471 = vmatprep.mubr.bf16.mxu0 %v1605_v2  ;;  %2557 = vmatprep.mubr.bf16.mxu1 %v1605_v2  ;;  %v3857_v1 = vld [vmem:[%s5095_s3 + $0x3c0] ss:$16 sps:$4 sm:$0xff]   ;;  %v3860_v2 = vld [vmem:[%s5095_s3 + $0x3c8] ss:$16 sps:$4 sm:$0xff]   ;;  %v3865_v3 = vld [vmem:[%s5095_s3 + $0x3e4] ss:$16 sps:$4 sm:$0xff]  }
 0x1af   :  { %2441 = vmatprep.subr.bf16.mxu0 %v3781_v5  ;;  %2527 = vmatprep.subr.bf16.mxu1 %v3784_v6  ;;  %v3868_v4 = vld [vmem:[%s5095_s3 + $0x3ec] ss:$16 sps:$4 sm:$0xff]   ;;  %v3863_v5 = vld [vmem:[%s5095_s3 + $0x3e0] ss:$16 sps:$4 sm:$0xff]   ;;  %v3866_v6 = vld [vmem:[%s5095_s3 + $0x3e8] ss:$16 sps:$4 sm:$0xff]  }
 0x1b1   :  { %2442 = vmatpush1.bf16.msra.mxu0 %v3779_v7  ;;  %2528 = vmatpush1.bf16.msra.mxu1 %v3782_v8  ;;  %v3869_v7 = vld [vmem:[%s5096_s5 + $0x40] sm:$0xff]  }
 0x1b2   :  { %2443 = vmatprep.subr.bf16.mxu0 %v3787_v9  ;;  %2529 = vmatprep.subr.bf16.mxu1 %v3790_v10  ;;  %v3870_v8 = vld [vmem:[%s5096_s5 + $0xc0] sm:$0xff]  }
 0x1b3   :  { %v3871_v9 = vld [vmem:[%s5096_s5] sm:$0xff]  }
 0x1b4   :  { %v3872_v10 = vld [vmem:[%s5096_s5 + $0x80] sm:$0xff]  }
 0x1b5   :  { %2444 = vmatpush1.bf16.msra.mxu0 %v3785_v11  ;;  %2530 = vmatpush1.bf16.msra.mxu1 %v3788_v12  ;;  %v3873_v11 = vld [vmem:[%s5096_s5 + $0x48] sm:$0xff]  }
 0x1b6   :  { %2445 = vmatprep.subr.bf16.mxu0 %v3793_v13  ;;  %2531 = vmatprep.subr.bf16.mxu1 %v3796_v14  ;;  %v3874_v12 = vld [vmem:[%s5096_s5 + $0xc8] sm:$0xff]  }
 0x1b7   :  { %v3875_v13 = vld [vmem:[%s5096_s5 + $0x8] sm:$0xff]  }
 0x1b8   :  { %v3876_v14 = vld [vmem:[%s5096_s5 + $0x88] sm:$0xff]  }
 0x1b9   :  { %2446 = vmatpush1.bf16.msra.mxu0 %v3791_v15  ;;  %2532 = vmatpush1.bf16.msra.mxu1 %v3794_v16  ;;  %v3877_v15 = vld [vmem:[%s5096_s5 + $0x50] sm:$0xff]  }
 0x1ba   :  { %2447 = vmatprep.subr.bf16.mxu0 %v3799_v17  ;;  %2533 = vmatprep.subr.bf16.mxu1 %v3802_v18  ;;  %v3879_v16 = vld [vmem:[%s5096_s5 + $0x10] sm:$0xff]   ;;  %v3881_v18 = vld [vmem:[%s5096_s5 + $0x58] sm:$0xff]  }
 0x1bb   :  { %v3880_v17 = vld [vmem:[%s5096_s5 + $0x90] sm:$0xff]  }
 0x1bd   :  { %2448 = vmatpush1.bf16.msra.mxu0 %v3797_v19  ;;  %2534 = vmatpush1.bf16.msra.mxu1 %v3800_v20  ;;  %v3882_v19 = vld [vmem:[%s5096_s5 + $0xd8] sm:$0xff]  }
 0x1be   :  { %2449 = vmatprep.subr.bf16.mxu0 %v3805_v21  ;;  %2535 = vmatprep.subr.bf16.mxu1 %v3808_v22  ;;  %v3883_v20 = vld [vmem:[%s5096_s5 + $0x18] sm:$0xff]   ;;  %v3885_v22 = vld [vmem:[%s5096_s5 + $0x60] sm:$0xff]  }
 0x1bf   :  { %v3884_v21 = vld [vmem:[%s5096_s5 + $0x98] sm:$0xff]  }
 0x1c1   :  { %2450 = vmatpush1.bf16.msra.mxu0 %v3803_v23  ;;  %2536 = vmatpush1.bf16.msra.mxu1 %v3806_v24  ;;  %v3886_v23 = vld [vmem:[%s5096_s5 + $0xe0] sm:$0xff]  }
 0x1c2   :  { %2451 = vmatprep.subr.bf16.mxu0 %v3811_v25  ;;  %2537 = vmatprep.subr.bf16.mxu1 %v3814_v26  ;;  %v3887_v24 = vld [vmem:[%s5096_s5 + $0x20] sm:$0xff]   ;;  %v3889_v26 = vld [vmem:[%s5096_s5 + $0x68] sm:$0xff]  }
 0x1c3   :  { %v3888_v25 = vld [vmem:[%s5096_s5 + $0xa0] sm:$0xff]  }
 0x1c5   :  { %2452 = vmatpush1.bf16.msra.mxu0 %v3809_v27  ;;  %2538 = vmatpush1.bf16.msra.mxu1 %v3812_v28  ;;  %v3890_v27 = vld [vmem:[%s5096_s5 + $0xe8] sm:$0xff]  }
 0x1c6   :  { %2453 = vmatprep.subr.bf16.mxu0 %v3817_v32  ;;  %2539 = vmatprep.subr.bf16.mxu1 %v3820_v35  ;;  %v3891_v28 = vld [vmem:[%s5096_s5 + $0x28] sm:$0xff]   ;;  %v3893_v35 = vld [vmem:[%s5096_s5 + $0x70] sm:$0xff]  }
 0x1c7   :  { %v3892_v32 = vld [vmem:[%s5096_s5 + $0xa8] sm:$0xff]  }
 0x1c9   :  { %2454 = vmatpush1.bf16.msra.mxu0 %v3815_v36  ;;  %2540 = vmatpush1.bf16.msra.mxu1 %v3818_v37  ;;  %v3894_v36 = vld [vmem:[%s5096_s5 + $0xf0] sm:$0xff]  }
 0x1ca   :  { %2455 = vmatprep.subr.bf16.mxu0 %v3823_v38  ;;  %2541 = vmatprep.subr.bf16.mxu1 %v3826_v39  ;;  %v3895_v37 = vld [vmem:[%s5096_s5 + $0x30] sm:$0xff]   ;;  %v3897_v39 = vld [vmem:[%s5096_s5 + $0x78] sm:$0xff]  }
 0x1cb   :  { %v3896_v38 = vld [vmem:[%s5096_s5 + $0xb0] sm:$0xff]  }
 0x1cd   :  { %2456 = vmatpush1.bf16.msra.mxu0 %v3821_v40  ;;  %2542 = vmatpush1.bf16.msra.mxu1 %v3824_v41  ;;  %v3898_v40 = vld [vmem:[%s5096_s5 + $0xf8] sm:$0xff]  }
 0x1ce   :  { %2457 = vmatprep.subr.bf16.mxu0 %v3829_v42  ;;  %2543 = vmatprep.subr.bf16.mxu1 %v3832_v43  ;;  %v3899_v41 = vld [vmem:[%s5096_s5 + $0x38] sm:$0xff]   ;;  %v1734_v43 = vld [vmem:[%s5098_s4] sm:$0xf] }
 0x1cf   :  { %v3900_v42 = vld [vmem:[%s5096_s5 + $0xb8] sm:$0xff]  }
 0x1d1   :  { %2458 = vmatpush1.bf16.msra.mxu0 %v3827_v44  ;;  %2544 = vmatpush1.bf16.msra.mxu1 %v3830_v45  ;;  %v1739_v44 = vrot.slane %v1734_v43, %v248_v30  ;;  %v1747_v45 = vrot.slane %v1734_v43, %v256_v31 }
 0x1d2   :  { %2459 = vmatprep.subr.bf16.mxu0 %v3835_v46  ;;  %2545 = vmatprep.subr.bf16.mxu1 %v3838_v47  ;;  %v1743_v46 = vrot.slane %v1734_v43, %v252_v33  ;;  %v1751_v47 = vrot.slane %v1734_v43, %v260_v34 }
 0x1d5   :  { %2460 = vmatpush1.bf16.msra.mxu0 %v3833_v48  ;;  %2546 = vmatpush1.bf16.msra.mxu1 %v3836_v49 }
 0x1d6   :  { %2461 = vmatprep.subr.bf16.mxu0 %v3841_v50  ;;  %2547 = vmatprep.subr.bf16.mxu1 %v3844_v51 }
 0x1d9   :  { %2462 = vmatpush1.bf16.msra.mxu0 %v3839_v52  ;;  %2548 = vmatpush1.bf16.msra.mxu1 %v3842_v53 }
 0x1da   :  { %2463 = vmatprep.subr.bf16.mxu0 %v3847_v54  ;;  %2549 = vmatprep.subr.bf16.mxu1 %v3850_v55 }
 0x1dd   :  { %2464 = vmatpush1.bf16.msra.mxu0 %v3845_v56  ;;  %2550 = vmatpush1.bf16.msra.mxu1 %v3848_v57 }
 0x1de   :  { %2465 = vmatprep.subr.bf16.mxu0 %v3853_v58  ;;  %2551 = vmatprep.subr.bf16.mxu1 %v3856_v59 }
 0x1e1   :  { %2466 = vmatpush1.bf16.msra.mxu0 %v3851_v60  ;;  %2552 = vmatpush1.bf16.msra.mxu1 %v3854_v61 }
 0x1e2   :  { %2467 = vmatprep.subr.bf16.mxu0 %v3859_v62  ;;  %2553 = vmatprep.subr.bf16.mxu1 %v3862_v63 }
 0x1e5   :  { %2468 = vmatpush1.bf16.msra.mxu0 %v3857_v1  ;;  %2554 = vmatpush1.bf16.msra.mxu1 %v3860_v2 }
 0x1e6   :  { %2469 = vmatprep.subr.bf16.mxu0 %v3865_v3  ;;  %2555 = vmatprep.subr.bf16.mxu1 %v3868_v4 }
 0x1e9   :  { %2470 = vmatpush1.bf16.msra.mxu0 %v3863_v5  ;;  %2556 = vmatpush1.bf16.msra.mxu1 %v3866_v6 }
 0x1ea   :  { %3290 = vmatprep.subr.bf16.mxu0 %v3869_v7  ;;  %3312 = vmatprep.subr.bf16.mxu1 %v3870_v8 }
 0x1ec   :  { %2472 = vmatmul.mubr.bf16.vlgmr.msra.gmra.mrb[4].mxu0 %v4787_v0  ;;  %2558 = vmatmul.mubr.bf16.vlgmr.msra.gmra.mrb[4].mxu1 %v4787_v0  ;;  %v3878_v0 = vld [vmem:[%s5096_s5 + $0xd0] sm:$0xff]  }
 0x1ed   :  { %3291 = vmatpush3.bf16.msra.mxu0 %v3871_v9  ;;  %3313 = vmatpush3.bf16.msra.mxu1 %v3872_v10  ;;  %v3257_v10 = vld [vmem:[%s5099_s6] ss:$0 sm:$0xff] }
 0x1ee   :  { %3292 = vmatprep.subr.bf16.mxu0 %v3873_v11  ;;  %3314 = vmatprep.subr.bf16.mxu1 %v3874_v12 }
 0x1f1   :  { %3293 = vmatpush3.bf16.msra.mxu0 %v3875_v13  ;;  %3315 = vmatpush3.bf16.msra.mxu1 %v3876_v14 }
 0x1f2   :  { %3294 = vmatprep.subr.bf16.mxu0 %v3877_v15  ;;  %3316 = vmatprep.subr.bf16.mxu1 %v3878_v0 }
 0x1f5   :  { %3295 = vmatpush3.bf16.msra.mxu0 %v3879_v16  ;;  %3317 = vmatpush3.bf16.msra.mxu1 %v3880_v17 }
 0x1f6   :  { %3296 = vmatprep.subr.bf16.mxu0 %v3881_v18  ;;  %3318 = vmatprep.subr.bf16.mxu1 %v3882_v19 }
 0x1f9   :  { %3297 = vmatpush3.bf16.msra.mxu0 %v3883_v20  ;;  %3319 = vmatpush3.bf16.msra.mxu1 %v3884_v21 }
 0x1fa   :  { %3298 = vmatprep.subr.bf16.mxu0 %v3885_v22  ;;  %3320 = vmatprep.subr.bf16.mxu1 %v3886_v23 }
 0x1fd   :  { %3299 = vmatpush3.bf16.msra.mxu0 %v3887_v24  ;;  %3321 = vmatpush3.bf16.msra.mxu1 %v3888_v25 }
 0x1fe   :  { %3300 = vmatprep.subr.bf16.mxu0 %v3889_v26  ;;  %3322 = vmatprep.subr.bf16.mxu1 %v3890_v27 }
 0x201   :  { %3301 = vmatpush3.bf16.msra.mxu0 %v3891_v28  ;;  %3323 = vmatpush3.bf16.msra.mxu1 %v3892_v32 }
 0x202   :  { %3302 = vmatprep.subr.bf16.mxu0 %v3893_v35  ;;  %3324 = vmatprep.subr.bf16.mxu1 %v3894_v36 }
 0x205   :  { %3303 = vmatpush3.bf16.msra.mxu0 %v3895_v37  ;;  %3325 = vmatpush3.bf16.msra.mxu1 %v3896_v38 }
 0x206   :  { %3304 = vmatprep.subr.bf16.mxu0 %v3897_v39  ;;  %3326 = vmatprep.subr.bf16.mxu1 %v3898_v40 }
 0x209   :  { %3305 = vmatpush3.bf16.msra.mxu0 %v3899_v41  ;;  %3327 = vmatpush3.bf16.msra.mxu1 %v3900_v42 }
 0x2bf   :  { %v2473_v48 = vpop.f32.mrb[4].mxu0  ;;  %v2559_v49 = vpop.f32.mrb[4].mxu1 }
 0x2c0   :  { %v3342_v50 = vadd.f32 %v2473_v48, %v1739_v44  ;;  %v3346_v51 = vadd.f32 %v2559_v49, %v1747_v45  ;;  %v2475_v52 = vpop.f32.mrb[5].mxu0  ;;  %v2561_v53 = vpop.f32.mrb[5].mxu1 }
 0x2c1   :  { %v3343_v54 = vadd.f32 %v2475_v52, %v1743_v46  ;;  %v3347_v55 = vadd.f32 %v2561_v53, %v1751_v47  ;;  %v2477_v56 = vpop.f32.mrb[6].mxu0  ;;  %v2563_v57 = vpop.f32.mrb[6].mxu1 }
 0x2c2   :  { %v3344_v30 = vadd.f32 %v2477_v56, %v1739_v44  ;;  %v3348_v58 = vadd.f32 %v2563_v57, %v1747_v45  ;;  %v2479_v59 = vpop.f32.mrb[7].mxu0  ;;  %v2565_v31 = vpop.f32.mrb[7].mxu1  ;;  %v2568_v33 = vmax.f32 %v3342_v50, 0.0  ;;  %v2570_v62 = vmax.f32 %v3346_v51, 0.0 }
 0x2c3   :  { %v3345_v60 = vadd.f32 %v2479_v59, %v1743_v46  ;;  %v3349_v61 = vadd.f32 %v2565_v31, %v1751_v47  ;;  %v2569_v63 = vmax.f32 %v3343_v54, 0.0  ;;  %v2571_v1 = vmax.f32 %v3347_v55, 0.0 }
 0x2c4   :  { %v2572_v29 = vmax.f32 %v3344_v30, 0.0  ;;  %v2574_v34 = vmax.f32 %v3348_v58, 0.0 }
 0x2c5   :  { %v2573_v2 = vmax.f32 %v3345_v60, 0.0  ;;  %v2575_v3 = vmax.f32 %v3349_v61, 0.0 }
 0x2c6   :  { %v2576_v4 = vpack.c.bf16 %v2572_v29, %v2568_v33  ;;  %v2578_v5 = vpack.c.bf16 %v2574_v34, %v2570_v62 }
 0x2c7   :  { %v2577_v6 = vpack.c.bf16 %v2573_v2, %v2569_v63  ;;  %v2579_v7 = vpack.c.bf16 %v2575_v3, %v2571_v1 }
 0x2c9   :  { %2875 = vmatprep.mubr.bf16.mxu0 %v2577_v6  ;;  %2916 = vmatprep.mubr.bf16.mxu1 %v2579_v7 }
 0x2ca   :  { %2876 = vmatmul.mubr.bf16.vlgmr.msra.gmra.mrb[8].mxu0 %v2576_v4  ;;  %2917 = vmatmul.mubr.bf16.vlgmr.msra.gmra.mrb[8].mxu1 %v2578_v5 }
 0x39d   :  { %v3306_v8 = vpop.f32.mrb[8].mxu0  ;;  %v3328_v9 = vpop.f32.mrb[8].mxu1 }
 0x39e   :  { %v3307_v11 = vpop.f32.mrb[9].mxu0  ;;  %v3329_v12 = vpop.f32.mrb[9].mxu1 }
 0x39f   :  { %v3308_v13 = vadd.f32 %v3307_v11, %v3306_v8  ;;  %v3330_v14 = vadd.f32 %v3329_v12, %v3328_v9  ;;  %v3309_v15 = vpop.f32.mrb[10].mxu0  ;;  %v3331_v0 = vpop.f32.mrb[10].mxu1 }
 0x3a0   :  { %v3310_v16 = vpop.f32.mrb[11].mxu0  ;;  %v3332_v17 = vpop.f32.mrb[11].mxu1 }
 0x3a1   :  { %v2878_v18 = vadd.f32 %v3308_v13, %v3257_v10  ;;  %v3311_v19 = vadd.f32 %v3310_v16, %v3309_v15  ;;  %v3333_v20 = vadd.f32 %v3332_v17, %v3331_v0 }
 0x3a3   :  { %v2919_v21 = vadd.f32 %v3330_v14, %v2878_v18  ;;  %v2881_v22 = vadd.f32 %v3311_v19, %v3257_v10 }
 0x3a5   :  { %2925 = vst [vmem:[%s5100_s7] sm:$0xff] %v2919_v21  ;;  %v2922_v23 = vadd.f32 %v3333_v20, %v2881_v22 }
 0x3a7   :  { %2926 = vst [vmem:[%s5100_s7 + $0x8] sm:$0xff] %v2922_v23 }

</bundles_post_ra>
